<compile_context>
chip_gen: v6e
topology: v6e:2x2x1
jax: 0.10.0
libtpu: 0.0.40
codegen_flags: <defaults>
</compile_context>

<pallas_src>
import functools
import math

import jax
import jax.numpy as jnp
from jax.experimental import pallas as pl
from jax.experimental.pallas import tpu as pltpu

# Full-precision f32 matmuls (kernel and reference) so the 1e-5 check is meaningful on TPU.
jax.config.update("jax_default_matmul_precision", "highest")


def _round_up(n: int, m: int) -> int:
    return ((n + m - 1) // m) * m


def _hyp_softmax_kernel(pt_ref, at_ref, stats_ref, x_ref, o_ref, *, c, approx_recip):
    c_f = jnp.float32(c)

    x = x_ref[...].astype(jnp.float32)          # (TB, D)
    pt = pt_ref[...]                            # (D, K) f32, resident across the grid
    at = at_ref[...]                            # (D, K) f32, resident across the grid

    # Per-class constants hoisted to the wrapper (computed once, not per tile).
    p2 = stats_ref[0:1, :]      # ||P_k||^2                         (1, K)
    pa = stats_ref[1:2, :]      # <P_k, A_k>                        (1, K)
    a2 = stats_ref[2:3, :]      # ||A_k||^2                         (1, K)
    beta = stats_ref[3:4, :]    # 1 - c ||P_k||^2                   (1, K)
    scale = stats_ref[4:5, :]   # lambda_{P_k} / (||A_k|| sqrt(c))  (1, K)

    # One per-row reduce + two MXU matmuls: all the Mobius addition needs.
    xx = jnp.sum(x * x, axis=-1, keepdims=True)                         # (TB, 1)
    px = jnp.dot(x, pt, preferred_element_type=jnp.float32,
                 precision=jax.lax.Precision.HIGHEST)                   # (TB, K)  <x_b, P_k>
    ax = jnp.dot(x, at, preferred_element_type=jnp.float32,
                 precision=jax.lax.Precision.HIGHEST)                   # (TB, K)  <x_b, A_k>

    # m = (-alpha * P_k + beta * x_b) / gamma  ==  (-P_k) (+)_c x_b
    alpha = 1.0 - 2.0 * c_f * px + c_f * xx                             # (TB, K)
    gamma = 1.0 - 2.0 * c_f * px + (c_f * c_f) * p2 * xx                # (TB, K)

    mg_dot_a = beta * ax - alpha * pa                                   # gamma   * <m, A_k>
    mg_norm2 = alpha * alpha * p2 - 2.0 * alpha * beta * px + beta * beta * xx  # gamma^2 * ||m||^2

    # num/den folded into one fraction so a single reciprocal/divide is needed.
    num = (2.0 * c_f) * mg_dot_a * gamma
    den = (gamma * gamma - c_f * mg_norm2) * a2
    if approx_recip:
        ratio = num * pl.reciprocal(den, approx=True)   # EUP slot, frees the VPU
    else:
        ratio = num / den

    # asinh(r) = sign(r) * log(|r| + sqrt(r^2 + 1))   (sign-stable form)
    r_abs = jnp.abs(ratio)
    asinh_abs = jnp.log(r_abs + jnp.sqrt(r_abs * r_abs + 1.0))
    logits = scale * jnp.where(ratio >= 0.0, asinh_abs, -asinh_abs)     # (TB, K)

    # Fused softmax over classes (lane axis) -> logits never round-trip to HBM.
    mx = jnp.max(logits, axis=-1, keepdims=True)
    e = jnp.exp(logits - mx)
    s = jnp.sum(e, axis=-1, keepdims=True)
    if approx_recip:
        probs = e * pl.reciprocal(s, approx=True)
    else:
        probs = e / s
    o_ref[...] = probs.astype(o_ref.dtype)


def hyp_softmax(P, A, x, c, *, tile_b: int = 1024, approx_recip: bool = True):
    """P, A: (K, D) class parameters; x: (B, D) points on the Poincare ball.

    Returns (K, B) class probabilities (softmax over the class axis), matching the
    PyTorch module's output layout. Compute is f32 in-kernel regardless of I/O dtype
    (bf16 inputs/outputs are supported and halve HBM traffic).
    """
    K, D = P.shape
    B, D2 = x.shape
    assert D2 == D and A.shape == (K, D)
    c = float(c)

    # ---- hoisted per-class constants (tiny, computed once in the wrapper) --------------
    Pf = P.astype(jnp.float32)
    Af = A.astype(jnp.float32)
    p2 = jnp.sum(Pf * Pf, axis=-1)
    a2 = jnp.sum(Af * Af, axis=-1)
    pa = jnp.sum(Pf * Af, axis=-1)
    beta = 1.0 - c * p2                                        # assumes ||P_k||^2 < 1/c
    scale = (2.0 / beta) / (jnp.sqrt(a2) * math.sqrt(c))       # lambda_P / (||A|| sqrt(c))
    stats = jnp.zeros((8, K), jnp.float32)                     # padded to 8 sublanes
    stats = stats.at[0].set(p2).at[1].set(pa).at[2].set(a2)
    stats = stats.at[3].set(beta).at[4].set(scale)

    Pt = Pf.T                                                  # (D, K) MXU-ready layout
    At = Af.T

    # ---- batch tiling: big tiles, padded batch, conservative VMEM budget ----------------
    # Budget covers the double-buffered f32 x-tile + output-tile; 12 MiB keeps us inside
    # v5e's 16 MiB default scoped VMEM and far inside v7x's 64 MiB physical VMEM.
    vmem_budget = 12 * 1024 * 1024
    bytes_per_row = 2 * 4 * (D + K)
    tile_cap = max(8, (vmem_budget // bytes_per_row) // 8 * 8)
    tile_b = min(tile_b, tile_cap, _round_up(B, 8))
    tile_b = max(8, _round_up(tile_b, 8))
    B_pad = _round_up(B, tile_b)
    if B_pad != B:
        x = jnp.pad(x, ((0, B_pad - B), (0, 0)))   # zero rows stay finite; sliced off below

    kernel = functools.partial(_hyp_softmax_kernel, c=c, approx_recip=approx_recip)
    probs = pl.pallas_call(
        kernel,
        out_shape=jax.ShapeDtypeStruct((B_pad, K), x.dtype),
        grid_spec=pltpu.PrefetchScalarGridSpec(
            num_scalar_prefetch=0,
            grid=(B_pad // tile_b,),
            in_specs=[
                pl.BlockSpec((D, K), lambda i: (0, 0)),        # P^T, fetched once
                pl.BlockSpec((D, K), lambda i: (0, 0)),        # A^T, fetched once
                pl.BlockSpec((8, K), lambda i: (0, 0)),        # per-class stats
                pl.BlockSpec((tile_b, D), lambda i: (i, 0)),   # x batch tile
            ],
            out_specs=pl.BlockSpec((tile_b, K), lambda i: (i, 0)),  # lane-dense (B, K)
        ),
        compiler_params=pltpu.CompilerParams(
            dimension_semantics=("parallel",),   # batch tiles shard across v7x's 2 TCs
        ),
    )(Pt, At, stats, x)

    # (B, K) -> (K, B) to match the PyTorch module output (softmax over dim=-2).
    return probs[:B].T


# ------------------------------- pure-JAX reference ----------------------------------------
def _mobius_addition_batch(a, b, c):
    """Standard batched Mobius addition: a (K, D), b (B, D) -> (K, B, D)."""
    ab = jnp.einsum("kd,bd->kb", a, b, precision=jax.lax.Precision.HIGHEST)   # (K, B)
    a2 = jnp.sum(a * a, axis=-1, keepdims=True)                               # (K, 1)
    b2 = jnp.sum(b * b, axis=-1)                                              # (B,)
    num = ((1.0 + 2.0 * c * ab + c * b2[None, :])[..., None] * a[:, None, :]
           + (1.0 - c * a2)[..., None] * b[None, :, :])
    den = 1.0 + 2.0 * c * ab + (c ** 2) * a2 * b2[None, :]
    return num / den[..., None]


def _reference(P, A, x, c):
    """Literal transcription of HypSoftmax.forward."""
    mob = _mobius_addition_batch(-P, x, c)                                    # (K, B, D)
    num = 2.0 * c * jnp.sum(mob * A[:, None, :], axis=-1)                     # (K, B)
    den = (1.0 - c * jnp.sum(mob * mob, axis=-1)) * jnp.sum(A * A, axis=-1, keepdims=True)
    lam = 2.0 / (1.0 - c * jnp.sum(P * P, axis=-1))                           # conformal (K,)
    coef = (lam / jnp.linalg.norm(A, axis=-1) / jnp.sqrt(c))[:, None]         # (K, 1)
    logits = coef * jnp.arcsinh(num / den)                                    # (K, B)
    return jax.nn.softmax(logits, axis=-2)                                    # over classes


if __name__ == "__main__":
    c = 1.0
    in_features = 128    # D: hyperbolic dimension (lane axis)
    out_features = 128   # K: number of classes
    batch = 50           # deliberately not a multiple of the tile -> exercises padding path

    key = jax.random.PRNGKey(0)
    kp, ka, kx = jax.random.split(key, 3)
    # Scaled so ||P_k||^2 < 1/c (points stay inside the Poincare ball).
    P = 0.05 * jax.random.normal(kp, (out_features, in_features), dtype=jnp.float32)
    A = 0.05 * jax.random.normal(ka, (out_features, in_features), dtype=jnp.float32)
    x = 0.05 * jax.random.normal(kx, (batch, in_features), dtype=jnp.float32)

    ref = _reference(P, A, x, c)

    # Exact-division path: tight check against the pure-JAX reference.
    out = jax.block_until_ready(hyp_softmax(P, A, x, c, approx_recip=False))
    assert out.shape == (out_features, batch)
    assert bool(jnp.allclose(out, ref, atol=1e-5, rtol=1e-5)), "mismatch vs reference (exact path)"

    # Performance path (EUP approx reciprocals): looser sanity check.
    out_fast = jax.block_until_ready(hyp_softmax(P, A, x, c, approx_recip=True))
    assert bool(jnp.allclose(out_fast, ref, atol=5e-3, rtol=5e-3)), "mismatch vs reference (approx path)"

    # Softmax columns (per input) sum to 1.
    col_sums = jnp.sum(out, axis=0)
    assert bool(jnp.allclose(col_sums, jnp.ones_like(col_sums), atol=1e-5))

    print("KERNEL_OK")
</pallas_src>

<mosaic_0001>
module attributes {stable_mosaic.version = 11 : i64} {
  func.func @_hyp_softmax_kernel(%arg0: i32, %arg1: memref<128x128xf32, #tpu.memory_space<vmem>>, %arg2: memref<128x128xf32, #tpu.memory_space<vmem>>, %arg3: memref<8x128xf32, #tpu.memory_space<vmem>>, %arg4: memref<56x128xf32, #tpu.memory_space<vmem>>, %arg5: memref<56x128xf32, #tpu.memory_space<vmem>>) attributes {dimension_semantics = [#tpu.dimension_semantics<parallel>], iteration_bounds = array<i64: 1>, scalar_prefetch = 0 : i64, scratch_operands = 0 : i64, tpu.core_type = #tpu.core_type<tc>, window_params = [{pipeline_mode = #tpu.pipeline_mode<synchronous>, transform_indices = @transform_0, window_bounds = array<i64: 128, 128>}, {pipeline_mode = #tpu.pipeline_mode<synchronous>, transform_indices = @transform_1, window_bounds = array<i64: 128, 128>}, {pipeline_mode = #tpu.pipeline_mode<synchronous>, transform_indices = @transform_2, window_bounds = array<i64: 8, 128>}, {transform_indices = @transform_3, window_bounds = array<i64: 56, 128>}, {transform_indices = @transform_4, window_bounds = array<i64: 56, 128>}]} {
    %c0 = arith.constant 0 : index
    %c0_0 = arith.constant 0 : index
    %0 = vector.load %arg4[%c0, %c0_0] : memref<56x128xf32, #tpu.memory_space<vmem>>, vector<56x128xf32>
    %c0_1 = arith.constant 0 : index
    %c0_2 = arith.constant 0 : index
    %1 = vector.load %arg1[%c0_1, %c0_2] : memref<128x128xf32, #tpu.memory_space<vmem>>, vector<128x128xf32>
    %c0_3 = arith.constant 0 : index
    %c0_4 = arith.constant 0 : index
    %2 = vector.load %arg2[%c0_3, %c0_4] : memref<128x128xf32, #tpu.memory_space<vmem>>, vector<128x128xf32>
    %c0_5 = arith.constant 0 : index
    %c0_6 = arith.constant 0 : index
    %3 = vector.load %arg3[%c0_5, %c0_6] : memref<8x128xf32, #tpu.memory_space<vmem>>, vector<1x128xf32>
    %c1 = arith.constant 1 : index
    %c0_7 = arith.constant 0 : index
    %4 = vector.load %arg3[%c1, %c0_7] : memref<8x128xf32, #tpu.memory_space<vmem>>, vector<1x128xf32>
    %c2 = arith.constant 2 : index
    %c0_8 = arith.constant 0 : index
    %5 = vector.load %arg3[%c2, %c0_8] : memref<8x128xf32, #tpu.memory_space<vmem>>, vector<1x128xf32>
    %c3 = arith.constant 3 : index
    %c0_9 = arith.constant 0 : index
    %6 = vector.load %arg3[%c3, %c0_9] : memref<8x128xf32, #tpu.memory_space<vmem>>, vector<1x128xf32>
    %c4 = arith.constant 4 : index
    %c0_10 = arith.constant 0 : index
    %7 = vector.load %arg3[%c4, %c0_10] : memref<8x128xf32, #tpu.memory_space<vmem>>, vector<1x128xf32>
    %8 = arith.mulf %0, %0 : vector<56x128xf32>
    %cst = arith.constant dense<0.000000e+00> : vector<56xf32>
    %9 = vector.multi_reduction <add>, %8, %cst [1] : vector<56x128xf32> to vector<56xf32>
    %10 = vector.shape_cast %9 : vector<56xf32> to vector<56x1xf32>
    %cst_11 = arith.constant dense<0.000000e+00> : vector<56x128xf32>
    %11 = tpu.matmul %0, %1, %cst_11 {dimension_numbers = #tpu.dot_dimension_numbers<[1], [0], [0], [1], [0, 0, 1, 1], [], []>, precision = #tpu.contract_precision<fp32>} : vector<56x128xf32>, vector<128x128xf32>, vector<56x128xf32> -> vector<56x128xf32>
    %cst_12 = arith.constant dense<0.000000e+00> : vector<56x128xf32>
    %12 = tpu.matmul %0, %2, %cst_12 {dimension_numbers = #tpu.dot_dimension_numbers<[1], [0], [0], [1], [0, 0, 1, 1], [], []>, precision = #tpu.contract_precision<fp32>} : vector<56x128xf32>, vector<128x128xf32>, vector<56x128xf32> -> vector<56x128xf32>
    %cst_13 = arith.constant 2.000000e+00 : f32
    %cst_14 = arith.constant 1.000000e+00 : f32
    %13 = arith.mulf %cst_13, %cst_14 : f32
    %14 = vector.broadcast %13 : f32 to vector<56x128xf32>
    %15 = arith.mulf %14, %11 : vector<56x128xf32>
    %cst_15 = arith.constant 1.000000e+00 : f32
    %16 = vector.broadcast %cst_15 : f32 to vector<56x128xf32>
    %17 = arith.subf %16, %15 : vector<56x128xf32>
    %cst_16 = arith.constant 1.000000e+00 : f32
    %18 = vector.broadcast %cst_16 : f32 to vector<56x1xf32>
    %19 = arith.mulf %18, %10 : vector<56x1xf32>
    %20 = vector.broadcast %19 : vector<56x1xf32> to vector<56x128xf32>
    %21 = arith.addf %17, %20 : vector<56x128xf32>
    %cst_17 = arith.constant 2.000000e+00 : f32
    %cst_18 = arith.constant 1.000000e+00 : f32
    %22 = arith.mulf %cst_17, %cst_18 : f32
    %23 = vector.broadcast %22 : f32 to vector<56x128xf32>
    %24 = arith.mulf %23, %11 : vector<56x128xf32>
    %cst_19 = arith.constant 1.000000e+00 : f32
    %25 = vector.broadcast %cst_19 : f32 to vector<56x128xf32>
    %26 = arith.subf %25, %24 : vector<56x128xf32>
    %cst_20 = arith.constant 1.000000e+00 : f32
    %cst_21 = arith.constant 1.000000e+00 : f32
    %27 = arith.mulf %cst_20, %cst_21 : f32
    %28 = vector.broadcast %27 : f32 to vector<1x128xf32>
    %29 = arith.mulf %28, %3 : vector<1x128xf32>
    %30 = vector.broadcast %29 : vector<1x128xf32> to vector<56x128xf32>
    %31 = vector.broadcast %10 : vector<56x1xf32> to vector<56x128xf32>
    %32 = arith.mulf %30, %31 : vector<56x128xf32>
    %33 = arith.addf %26, %32 : vector<56x128xf32>
    %34 = vector.broadcast %6 : vector<1x128xf32> to vector<56x128xf32>
    %35 = arith.mulf %34, %12 : vector<56x128xf32>
    %36 = vector.broadcast %4 : vector<1x128xf32> to vector<56x128xf32>
    %37 = arith.mulf %21, %36 : vector<56x128xf32>
    %38 = arith.subf %35, %37 : vector<56x128xf32>
    %39 = arith.mulf %21, %21 : vector<56x128xf32>
    %40 = vector.broadcast %3 : vector<1x128xf32> to vector<56x128xf32>
    %41 = arith.mulf %39, %40 : vector<56x128xf32>
    %cst_22 = arith.constant 2.000000e+00 : f32
    %42 = vector.broadcast %cst_22 : f32 to vector<56x128xf32>
    %43 = arith.mulf %42, %21 : vector<56x128xf32>
    %44 = vector.broadcast %6 : vector<1x128xf32> to vector<56x128xf32>
    %45 = arith.mulf %43, %44 : vector<56x128xf32>
    %46 = arith.mulf %45, %11 : vector<56x128xf32>
    %47 = arith.subf %41, %46 : vector<56x128xf32>
    %48 = arith.mulf %6, %6 : vector<1x128xf32>
    %49 = vector.broadcast %48 : vector<1x128xf32> to vector<56x128xf32>
    %50 = vector.broadcast %10 : vector<56x1xf32> to vector<56x128xf32>
    %51 = arith.mulf %49, %50 : vector<56x128xf32>
    %52 = arith.addf %47, %51 : vector<56x128xf32>
    %cst_23 = arith.constant 2.000000e+00 : f32
    %cst_24 = arith.constant 1.000000e+00 : f32
    %53 = arith.mulf %cst_23, %cst_24 : f32
    %54 = vector.broadcast %53 : f32 to vector<56x128xf32>
    %55 = arith.mulf %54, %38 : vector<56x128xf32>
    %56 = arith.mulf %55, %33 : vector<56x128xf32>
    %57 = arith.mulf %33, %33 : vector<56x128xf32>
    %cst_25 = arith.constant 1.000000e+00 : f32
    %58 = vector.broadcast %cst_25 : f32 to vector<56x128xf32>
    %59 = arith.mulf %58, %52 : vector<56x128xf32>
    %60 = arith.subf %57, %59 : vector<56x128xf32>
    %61 = vector.broadcast %5 : vector<1x128xf32> to vector<56x128xf32>
    %62 = arith.mulf %60, %61 : vector<56x128xf32>
    %63 = arith.divf %56, %62 : vector<56x128xf32>
    %64 = math.absf %63 : vector<56x128xf32>
    %65 = arith.mulf %64, %64 : vector<56x128xf32>
    %cst_26 = arith.constant 1.000000e+00 : f32
    %66 = vector.broadcast %cst_26 : f32 to vector<56x128xf32>
    %67 = arith.addf %65, %66 : vector<56x128xf32>
    %68 = math.sqrt %67 : vector<56x128xf32>
    %69 = arith.addf %64, %68 : vector<56x128xf32>
    %70 = math.log %69 : vector<56x128xf32>
    %cst_27 = arith.constant 0.000000e+00 : f32
    %71 = vector.broadcast %cst_27 : f32 to vector<56x128xf32>
    %72 = arith.cmpf oge, %63, %71 : vector<56x128xf32>
    %cst_28 = arith.constant 0.000000e+00 : f32
    %73 = vector.broadcast %cst_28 : f32 to vector<56x128xf32>
    %74 = arith.subf %73, %70 : vector<56x128xf32>
    %75 = arith.select %72, %70, %74 : vector<56x128xi1>, vector<56x128xf32>
    %76 = vector.broadcast %7 : vector<1x128xf32> to vector<56x128xf32>
    %77 = arith.mulf %76, %75 : vector<56x128xf32>
    %cst_29 = arith.constant dense<0xFF800000> : vector<56xf32>
    %78 = vector.multi_reduction <maximumf>, %77, %cst_29 [1] : vector<56x128xf32> to vector<56xf32>
    %79 = vector.shape_cast %78 : vector<56xf32> to vector<56x1xf32>
    %80 = vector.broadcast %79 : vector<56x1xf32> to vector<56x128xf32>
    %81 = arith.subf %77, %80 : vector<56x128xf32>
    %82 = math.exp %81 : vector<56x128xf32>
    %cst_30 = arith.constant dense<0.000000e+00> : vector<56xf32>
    %83 = vector.multi_reduction <add>, %82, %cst_30 [1] : vector<56x128xf32> to vector<56xf32>
    %84 = vector.shape_cast %83 : vector<56xf32> to vector<56x1xf32>
    %85 = vector.broadcast %84 : vector<56x1xf32> to vector<56x128xf32>
    %86 = arith.divf %82, %85 : vector<56x128xf32>
    %c0_31 = arith.constant 0 : index
    %c0_32 = arith.constant 0 : index
    %87 = vector.load %arg5[%c0_31, %c0_32] : memref<56x128xf32, #tpu.memory_space<vmem>>, vector<56x128xf32>
    tpu.vector_store %arg5[%c0_31, %c0_32], %86 {strides = array<i32>} : memref<56x128xf32, #tpu.memory_space<vmem>>, vector<56x128xf32>,
    return
  }
  func.func @transform_0(%arg0: i32) -> (i32, i32) {
    %c0_i32 = arith.constant 0 : i32
    %c0_i32_0 = arith.constant 0 : i32
    %c0_i32_1 = arith.constant 0 : i32
    return %c0_i32, %c0_i32_0 : i32, i32
  }
  func.func @transform_1(%arg0: i32) -> (i32, i32) {
    %c0_i32 = arith.constant 0 : i32
    %c0_i32_0 = arith.constant 0 : i32
    %c0_i32_1 = arith.constant 0 : i32
    return %c0_i32, %c0_i32_0 : i32, i32
  }
  func.func @transform_2(%arg0: i32) -> (i32, i32) {
    %c0_i32 = arith.constant 0 : i32
    %c0_i32_0 = arith.constant 0 : i32
    %c0_i32_1 = arith.constant 0 : i32
    return %c0_i32, %c0_i32_0 : i32, i32
  }
  func.func @transform_3(%arg0: i32) -> (i32, i32) {
    %c0_i32 = arith.constant 0 : i32
    %c0_i32_0 = arith.constant 0 : i32
    return %arg0, %c0_i32 : i32, i32
  }
  func.func @transform_4(%arg0: i32) -> (i32, i32) {
    %c0_i32 = arith.constant 0 : i32
    %c0_i32_0 = arith.constant 0 : i32
    return %arg0, %c0_i32 : i32, i32
  }
}

</mosaic_0001>

<bundles_post_ra>
// kernel: tpu_custom_call.1
= control target key start
LH: loop header
LB: loop body
LE: loop exit
PB: predicated region body
PF: predicated region fallthrough
CT: control target
= control target key end

     0   :  { %9 = vsyncpa [#allocation3], 0  ;;  %s4896_s0 = inlined_call_operand.hbm [shape: f32[128,128], index: 0, kind: input, shape index: {}]   ;;  %s4897_s1 = inlined_call_operand.hbm [shape: f32[128,128], index: 1, kind: input, shape index: {}]   ;;  %s4898_s2 = inlined_call_operand.hbm [shape: f32[8,128], index: 2, kind: input, shape index: {}]   ;;  %s4899_s3 = inlined_call_operand.hbm [shape: f32[56,128], index: 3, kind: input, shape index: {}]   ;;  %s4900_s4 = inlined_call_operand.hbm [shape: f32[56,128], index: 4, kind: output, shape index: {}]  }
   0x1   :  { %10 = vsyncpa [#allocation6], 0 }
   0x2   :  { %11 = vsyncpa [#allocation9], 0 }
   0x3   :  { %12 = vsyncpa [#allocation4], 0  ;;  %s3438_s15 = smov [#allocation5]   ;;  %s3439_s17 = smov [#allocation2]  }
   0x4   :  { %s30_s16 = sshll.u32 %s3438_s15, 4  ;;  %s18_s18 = sshll.u32 %s3439_s17, 4  ;;  %s31_s16 = int_to_ptr.vmem [resolvable:$true] %s30_s16  ;;  %s19_s18 = int_to_ptr.vmem [resolvable:$true] %s18_s18 }
   0x5   :  { %s3338_s19 = scalar_lea.vmem %s31_s16, 2048  ;;  %p3343_p1 = scmp.lt.s32.totalorder %s31_s16, %s31_s16 }
   0x6   :  { %p3339_p0 = scmp.ne.s32.totalorder %s31_s16, %s3338_s19  ;;  %p3344_p2 = scmp.lt.s32.totalorder %s3338_s19, %s3338_s19 }
   0x8   :  { %p3345_p3 = por %p3344_p2, %p3343_p1 }
   0xa   :  { %p3346_p4 = pnand %p3345_p3, %p3339_p0 }
   0xc   :  { %3349 = shalt.err (!%p3346_p4)
}
   0xd   :  { %s3440_s20 = smov 128   ;;  %s3441_s21 = smov 8  }
   0xe   :  { %36 = dma.hbm_to_vmem [thread:$0]  %s4897_s1, 2048, %s31_s16, [#allocation6], %s3440_s20, %s3440_s20, %s3441_s21  }
   0xf   :  { %s3358_s24 = scalar_lea.vmem %s19_s18, 2048  ;;  %p3363_p6 = scmp.lt.s32.totalorder %s19_s18, %s19_s18 }
  0x10   :  { %p3359_p5 = scmp.ne.s32.totalorder %s19_s18, %s3358_s24  ;;  %p3364_p7 = scmp.lt.s32.totalorder %s3358_s24, %s3358_s24 }
  0x12   :  { %p3365_p8 = por %p3364_p7, %p3363_p6 }
  0x14   :  { %p3366_p9 = pnand %p3365_p8, %p3359_p5 }
  0x16   :  { %3369 = shalt.err (!%p3366_p9)
}
  0x17   :  { %24 = dma.hbm_to_vmem [thread:$0]  %s4896_s0, 2048, %s19_s18, [#allocation3], %s3440_s20, %s3440_s20, %s3441_s21  }
  0x18   :  { %s3442_s27 = smov [#allocation7]   ;;  %s3443_s29 = smov [#allocation8]  }
  0x19   :  { %s43_s28 = sshll.u32 %s3442_s27, 4  ;;  %s52_s30 = sshll.u32 %s3443_s29, 4  ;;  %s44_s28 = int_to_ptr.vmem [resolvable:$true] %s43_s28  ;;  %s53_s30 = int_to_ptr.vmem [resolvable:$true] %s52_s30 }
  0x1a   :  { %s3378_s1 = scalar_lea.vmem %s44_s28, 128  ;;  %p3383_p11 = scmp.lt.s32.totalorder %s44_s28, %s44_s28 }
  0x1b   :  { %p3379_p10 = scmp.ne.s32.totalorder %s44_s28, %s3378_s1  ;;  %p3384_p12 = scmp.lt.s32.totalorder %s3378_s1, %s3378_s1 }
  0x1d   :  { %p3385_p13 = por %p3384_p12, %p3383_p11 }
  0x1f   :  { %p3386_p0 = pnand %p3385_p13, %p3379_p10 }
  0x21   :  { %3389 = shalt.err (!%p3386_p0)
}
  0x22   :  { %46 = dma.hbm_to_vmem [thread:$0]  %s4898_s2, 128, %s44_s28, [#allocation6]  }
  0x23   :  { %s3398_s7 = scalar_lea.vmem %s53_s30, 896  ;;  %p3403_p2 = scmp.lt.s32.totalorder %s53_s30, %s53_s30 }
  0x24   :  { %p3399_p1 = scmp.ne.s32.totalorder %s53_s30, %s3398_s7  ;;  %p3404_p3 = scmp.lt.s32.totalorder %s3398_s7, %s3398_s7 }
  0x26   :  { %p3405_p4 = por %p3404_p3, %p3403_p2 }
  0x28   :  { %p3406_p5 = pnand %p3405_p4, %p3399_p1 }
  0x2a   :  { %3409 = shalt.err (!%p3406_p5)
}
  0x2b   :  { %58 = dma.hbm_to_vmem [thread:$0]  %s4899_s3, 896, %s53_s30, [#allocation9], %s3440_s20, %s3440_s20, %s3441_s21  }
  0x2c   :  { %3430 = dma.done.wait [#allocation3], 2048  }
  0x2d   :  { %3431 = vsyncadd [#allocation3], 4294965248 }
  0x2e   :  { %3432 = dma.done.wait [#allocation6], 2176  }
  0x2f   :  { %3433 = vsyncadd [#allocation6], 4294965120 }
  0x30   :  { %3434 = dma.done.wait [#allocation9], 896  }
  0x31   :  { %3435 = vsyncadd [#allocation9], 4294966400  ;;  %v3444_v0 = vmov 0.0   ;;  %vm3445_vm0 = vmmov 0   ;;  %v93_v1 = vld [vmem:[#allocation2 + $0x78] sm:$0xff]  ;;  %v92_v2 = vld [vmem:[#allocation2 + $0x70] sm:$0xff] }
  0x32   :  { %2608 = vmatprep.subr.mxu0 %v3444_v0  ;;  %2661 = vmatprep.subr.mxu1 %v3444_v0  ;;  %v91_v3 = vld [vmem:[#allocation2 + $0x68] sm:$0xff]  ;;  %v3499_v4 = vand.u32 4294901760, %v93_v1  ;;  %v3501_v5 = vand.u32 4294901760, %v92_v2  ;;  %v90_v7 = vld [vmem:[#allocation2 + $0x60] sm:$0xff]  ;;  %v89_v8 = vld [vmem:[#allocation2 + $0x58] sm:$0xff]  ;;  %s3446_s2 = smov [#allocation10]  }
  0x33   :  { %2640 = vmatprep.mubr.msk.f32.mxu0 %vm3445_vm0, %v3444_v0  ;;  %2693 = vmatprep.mubr.msk.f32.mxu1 %vm3445_vm0, %v3444_v0  ;;  %v3503_v6 = vand.u32 4294901760, %v91_v3  ;;  %v88_v9 = vld [vmem:[#allocation2 + $0x50] sm:$0xff]  ;;  %v3505_v10 = vand.u32 4294901760, %v90_v7  ;;  %v3507_v11 = vand.u32 4294901760, %v89_v8  ;;  %v87_v13 = vld [vmem:[#allocation2 + $0x48] sm:$0xff]  ;;  %v86_v14 = vld [vmem:[#allocation2 + $0x40] sm:$0xff] }
  0x34   :  { %v3509_v12 = vand.u32 4294901760, %v88_v9  ;;  %2609 = vmatpush3.msra.mxu0 %v3499_v4  ;;  %v3513_v15 = vsub.f32 %v93_v1, %v3499_v4  ;;  %v3516_v16 = vsub.f32 %v92_v2, %v3501_v5  ;;  %v3518_v17 = vand.u32 4294901760, %v87_v13  ;;  %v85_v19 = vld [vmem:[#allocation2 + $0x38] sm:$0xff]  ;;  %v84_v26 = vld [vmem:[#allocation2 + $0x30] sm:$0xff]  ;;  %v83_v34 = vld [vmem:[#allocation2 + $0x28] sm:$0xff]  ;;  %s2314_s3 = sshll.u32 %s3446_s2, 4  ;;  %s2315_s3 = int_to_ptr.vmem [resolvable:$true] %s2314_s3 }
  0x35   :  { %v3521_v18 = vsub.f32 %v91_v3, %v3503_v6  ;;  %2610 = vmatprep.subr.mxu0 %v3444_v0  ;;  %v3525_v20 = vsub.f32 %v90_v7, %v3505_v10  ;;  %v3528_v21 = vsub.f32 %v89_v8, %v3507_v11  ;;  %v3534_v25 = vand.u32 4294901760, %v86_v14  ;;  %v82_v41 = vld [vmem:[#allocation2 + $0x20] sm:$0xff]  ;;  %v81_v49 = vld [vmem:[#allocation2 + $0x18] sm:$0xff]  ;;  %v71_v50 = vld [vmem:[#allocation8] sm:$0xff]  ;;  %s3410_s9 = scalar_lea.vmem %s2315_s3, 896  ;;  %p3415_p7 = scmp.lt.s32.totalorder %s2315_s3, %s2315_s3 }
  0x36   :  { %2611 = vmatpush3.msra.mxu0 %v3501_v5  ;;  %v290_v22 = vand.u32 4294901760, %v3513_v15  ;;  %v297_v23 = vand.u32 4294901760, %v3516_v16  ;;  %v3538_v28 = vand.u32 4294901760, %v85_v19  ;;  %v3542_v30 = vsub.f32 %v88_v9, %v3509_v12  ;;  %v80_v54 = vld [vmem:[#allocation2 + $0x10] sm:$0xff]  ;;  %v79_v63 = vld [vmem:[#allocation2 + $0x8] sm:$0xff]  ;;  %p3411_p6 = scmp.ne.s32.totalorder %s2315_s3, %s3410_s9  ;;  %p3416_p8 = scmp.lt.s32.totalorder %s3410_s9, %s3410_s9 }
  0x37   :  { %v4914_v24 = vand.u32 4294901760, %v3521_v18  ;;  %2612 = vmatprep.subr.mxu0 %v3444_v0  ;;  %v4913_v27 = vand.u32 4294901760, %v3525_v20  ;;  %v4912_v29 = vand.u32 4294901760, %v3528_v21  ;;  %v3555_v35 = vsub.f32 %v87_v13, %v3518_v17 }
  0x38   :  { %2613 = vmatpush3.msra.mxu0 %v3503_v6  ;;  %v291_v31 = vsub.f32 %v3513_v15, %v290_v22  ;;  %v298_v32 = vsub.f32 %v3516_v16, %v297_v23  ;;  %v3558_v36 = vand.u32 4294901760, %v84_v26  ;;  %v4911_v40 = vand.u32 4294901760, %v3542_v30  ;;  %p3417_p9 = por %p3416_p8, %p3415_p7 }
  0x39   :  { %v305_v33 = vsub.f32 %v3521_v18, %v4914_v24  ;;  %2614 = vmatprep.subr.mxu0 %v3444_v0  ;;  %v312_v39 = vsub.f32 %v3525_v20, %v4913_v27  ;;  %v3566_v42 = vand.u32 4294901760, %v83_v34  ;;  %v3569_v43 = vsub.f32 %v86_v14, %v3534_v25 }
  0x3a   :  { %2615 = vmatpush3.msra.mxu0 %v3505_v10  ;;  %v292_v37 = vand.u32 4294901760, %v291_v31  ;;  %v299_v38 = vand.u32 4294901760, %v298_v32  ;;  %v319_v45 = vsub.f32 %v3528_v21, %v4912_v29  ;;  %v4910_v46 = vand.u32 4294901760, %v3555_v35  ;;  %v72_v32 = vld [vmem:[#allocation8 + $0x8] sm:$0xff]  ;;  %p3418_p10 = pnand %p3417_p9, %p3411_p6 }
  0x3b   :  { %2616 = vmatprep.subr.mxu0 %v3444_v0  ;;  %v306_v44 = vand.u32 4294901760, %v305_v33  ;;  %v3577_v47 = vsub.f32 %v85_v19, %v3538_v28  ;;  %v3581_v48 = vand.u32 4294901760, %v82_v41  ;;  %v313_v51 = vand.u32 4294901760, %v312_v39  ;;  %v78_v19 = vld [vmem:[#allocation2] sm:$0xff] }
  0x3c   :  { %2617 = vmatpush3.msra.mxu0 %v3507_v11  ;;  %2662 = vmatpush3.msra.mxu1 %v292_v37  ;;  %v326_v52 = vsub.f32 %v3542_v30, %v4911_v40  ;;  %v4909_v53 = vand.u32 4294901760, %v3569_v43  ;;  %v3589_v55 = vsub.f32 %v84_v26, %v3558_v36  ;;  %v3595_v57 = vsub.f32 %v83_v34, %v3566_v42 }
  0x3d   :  { %2618 = vmatprep.subr.mxu0 %v3444_v0  ;;  %2663 = vmatprep.subr.mxu1 %v3444_v0  ;;  %v4908_v56 = vand.u32 4294901760, %v3577_v47  ;;  %v320_v58 = vand.u32 4294901760, %v319_v45  ;;  %v333_v59 = vsub.f32 %v3555_v35, %v4910_v46  ;;  %v3601_v60 = vand.u32 4294901760, %v81_v49 }
  0x3e   :  { %2619 = vmatpush3.msra.mxu0 %v3509_v12  ;;  %2664 = vmatpush3.msra.mxu1 %v299_v38  ;;  %v3603_v61 = vand.u32 4294901760, %v71_v50  ;;  %v3607_v62 = vand.u32 4294901760, %v80_v54  ;;  %v327_v1 = vand.u32 4294901760, %v326_v52  ;;  %v340_v2 = vsub.f32 %v3569_v43, %v4909_v53 }
  0x3f   :  { %2620 = vmatprep.subr.mxu0 %v3444_v0  ;;  %2665 = vmatprep.subr.mxu1 %v3444_v0  ;;  %v4907_v3 = vand.u32 4294901760, %v3589_v55  ;;  %v3615_v7 = vsub.f32 %v82_v41, %v3581_v48  ;;  %v347_v8 = vsub.f32 %v3577_v47, %v4908_v56  ;;  %v4906_v9 = vand.u32 4294901760, %v3595_v57 }
  0x40   :  { %2621 = vmatpush3.msra.mxu0 %v3518_v17  ;;  %2666 = vmatpush3.msra.mxu1 %v306_v44  ;;  %v334_v13 = vand.u32 4294901760, %v333_v59  ;;  %v3624_v14 = vand.u32 4294901760, %v79_v63  ;;  %v3627_v26 = vsub.f32 %v71_v50, %v3603_v61  ;;  %v3630_v31 = vsub.f32 %v81_v49, %v3601_v60  ;;  %v73_v59 = vld [vmem:[#allocation8 + $0x10] sm:$0xff] }
  0x41   :  { %2622 = vmatprep.subr.mxu0 %v3444_v0  ;;  %2667 = vmatprep.subr.mxu1 %v3444_v0  ;;  %v341_v33 = vand.u32 4294901760, %v340_v2  ;;  %v354_v34 = vsub.f32 %v3589_v55, %v4907_v3  ;;  %v4903_v37 = vand.u32 4294901760, %v3615_v7  ;;  %v3640_v38 = vsub.f32 %v80_v54, %v3607_v62 }
  0x42   :  { %2623 = vmatpush3.msra.mxu0 %v3534_v25  ;;  %2668 = vmatpush3.msra.mxu1 %v313_v51  ;;  %v348_v39 = vand.u32 4294901760, %v347_v8  ;;  %v361_v41 = vsub.f32 %v3595_v57, %v4906_v9  ;;  %v3647_v44 = vand.u32 4294901760, %v78_v19  ;;  %v3651_v45 = vand.u32 4294901760, %v3627_v26 }
  0x43   :  { %2624 = vmatprep.subr.mxu0 %v3444_v0  ;;  %2669 = vmatprep.subr.mxu1 %v3444_v0  ;;  %v4901_v49 = vand.u32 4294901760, %v3630_v31  ;;  %v3655_v50 = vsub.f32 %v79_v63, %v3624_v14  ;;  %v3657_v51 = vand.u32 4294901760, %v72_v32  ;;  %v355_v52 = vand.u32 4294901760, %v354_v34 }
  0x44   :  { %2625 = vmatpush3.msra.mxu0 %v3538_v28  ;;  %2670 = vmatpush3.msra.mxu1 %v320_v58  ;;  %v368_v54 = vsub.f32 %v3615_v7, %v4903_v37  ;;  %v4902_v58 = vand.u32 4294901760, %v3640_v38  ;;  %v362_v63 = vand.u32 4294901760, %v361_v41  ;;  %v220_v2 = vsub.f32 %v3627_v26, %v3651_v45 }
  0x45   :  { %2626 = vmatprep.subr.mxu0 %v3444_v0  ;;  %2671 = vmatprep.subr.mxu1 %v3444_v0  ;;  %v375_v8 = vsub.f32 %v3630_v31, %v4901_v49 }
  0x46   :  { %2627 = vmatpush3.msra.mxu0 %v3558_v36  ;;  %2672 = vmatpush3.msra.mxu1 %v327_v1  ;;  %v3669_v1 = vsub.f32 %v78_v19, %v3647_v44  ;;  %v3683_v19 = vand.u32 4294901760, %v73_v59  ;;  %v369_v34 = vand.u32 4294901760, %v368_v54  ;;  %v3693_v41 = vand.u32 4294901760, %v220_v2 }
  0x47   :  { %2628 = vmatprep.subr.mxu0 %v3444_v0  ;;  %2673 = vmatprep.subr.mxu1 %v3444_v0  ;;  %v376_v49 = vand.u32 4294901760, %v375_v8 }
  0x48   :  { %2629 = vmatpush3.msra.mxu0 %v3566_v42  ;;  %2674 = vmatpush3.msra.mxu1 %v334_v13  ;;  %v4904_v13 = vand.u32 4294901760, %v3655_v50  ;;  %v3704_v37 = vsub.f32 %v73_v59, %v3683_v19 }
  0x49   :  { %2630 = vmatprep.subr.mxu0 %v3444_v0  ;;  %2675 = vmatprep.subr.mxu1 %v3444_v0 }
  0x4a   :  { %2631 = vmatpush3.msra.mxu0 %v3581_v48  ;;  %2676 = vmatpush3.msra.mxu1 %v341_v33  ;;  %v3679_v33 = vsub.f32 %v72_v32, %v3657_v51  ;;  %v4905_v32 = vand.u32 4294901760, %v3669_v1 }
  0x4b   :  { %2632 = vmatprep.subr.mxu0 %v3444_v0  ;;  %2677 = vmatprep.subr.mxu1 %v3444_v0 }
  0x4c   :  { %2633 = vmatpush3.msra.mxu0 %v3601_v60  ;;  %2678 = vmatpush3.msra.mxu1 %v348_v39  ;;  %v382_v39 = vsub.f32 %v3640_v38, %v4902_v58  ;;  %v3699_v54 = vand.u32 4294901760, %v3679_v33  ;;  %v74_v58 = vld [vmem:[#allocation8 + $0x18] sm:$0xff]  ;;  %v396_v2 = vsub.f32 %v3669_v1, %v4905_v32 }
  0x4d   :  { %2634 = vmatprep.subr.mxu0 %v3444_v0  ;;  %2679 = vmatprep.subr.mxu1 %v3444_v0  ;;  %v3712_v8 = vand.u32 4294901760, %v74_v58 }
  0x4e   :  { %2635 = vmatpush3.msra.mxu0 %v3607_v62  ;;  %2680 = vmatpush3.msra.mxu1 %v355_v52  ;;  %v389_v52 = vsub.f32 %v3655_v50, %v4904_v13  ;;  %v230_v59 = vsub.f32 %v3679_v33, %v3699_v54 }
  0x4f   :  { %2636 = vmatprep.subr.mxu0 %v3444_v0  ;;  %2681 = vmatprep.subr.mxu1 %v3444_v0 }
  0x50   :  { %2637 = vmatpush3.msra.mxu0 %v3624_v14  ;;  %2682 = vmatpush3.msra.mxu1 %v362_v63  ;;  %v383_v63 = vand.u32 4294901760, %v382_v39  ;;  %v390_v13 = vand.u32 4294901760, %v389_v52  ;;  %v75_v39 = vld [vmem:[#allocation8 + $0x20] sm:$0xff]  ;;  %v3726_v52 = vsub.f32 %v74_v58, %v3712_v8  ;;  %v3729_v32 = vand.u32 4294901760, %v230_v59 }
  0x51   :  { %2638 = vmatprep.subr.mxu0 %v3444_v0  ;;  %2683 = vmatprep.subr.mxu1 %v3444_v0  ;;  %v3735_v9 = vand.u32 4294901760, %v75_v39 }
  0x52   :  { %2639 = vmatpush3.msra.mxu0 %v3647_v44  ;;  %2684 = vmatpush3.msra.mxu1 %v369_v34  ;;  %v3720_v34 = vand.u32 4294901760, %v3704_v37  ;;  %v3742_v58 = vand.u32 4294901760, %v3726_v52 }
  0x53   :  { %2685 = vmatprep.subr.mxu1 %v3444_v0  ;;  %2714 = vmatprep.subr.mxu0 %v3444_v0  ;;  %v3751_v59 = vsub.f32 %v75_v39, %v3735_v9 }
  0x54   :  { %2641 = vmatmul.mubr.f32.vlgmr.msra.gmra.mxu0 %v3693_v41  ;;  %2686 = vmatpush3.msra.mxu1 %v376_v49  ;;  %4939 = vst [vmem:[#allocation15_spill] sm:$0xff] %v3720_v34  ;;  %v397_v49 = vand.u32 4294901760, %v396_v2  ;;  %4940 = vst [vmem:[#allocation16_spill] sm:$0xff] %v3742_v58 }
  0x55   :  { %2715 = vmatpush3.msra.mxu0 %v3513_v15  ;;  %2687 = vmatprep.subr.mxu1 %v3444_v0  ;;  %v3767_v39 = vand.u32 4294901760, %v3751_v59  ;;  %v4946_v15 = vand.u32 4294901760, %v3521_v18 }
  0x56   :  { %2716 = vmatprep.subr.mxu0 %v3444_v0  ;;  %2688 = vmatpush3.msra.mxu1 %v383_v63  ;;  %v240_v63 = vsub.f32 %v3704_v37, %v3720_v34 }
  0x57   :  { %2717 = vmatpush3.msra.mxu0 %v3516_v16  ;;  %2689 = vmatprep.subr.mxu1 %v3444_v0  ;;  %4941 = vst [vmem:[#allocation17_spill] sm:$0xff] %v3767_v39  ;;  %v260_v46 = vsub.f32 %v3751_v59, %v3767_v39  ;;  %v4947_v16 = vand.u32 4294901760, %v3525_v20 }
  0x58   :  { %2718 = vmatprep.subr.mxu0 %v3444_v0  ;;  %2690 = vmatpush3.msra.mxu1 %v390_v13  ;;  %v76_v13 = vld [vmem:[#allocation8 + $0x28] sm:$0xff]  ;;  %v3748_v2 = vand.u32 4294901760, %v240_v63  ;;  %v77_v63 = vld [vmem:[#allocation8 + $0x30] sm:$0xff] }
  0x59   :  { %2719 = vmatpush3.msra.mxu0 %v3521_v18  ;;  %2691 = vmatprep.subr.mxu1 %v3444_v0  ;;  %v3759_v3 = vand.u32 4294901760, %v76_v13  ;;  %v3786_v40 = vand.u32 4294901760, %v77_v63  ;;  %v4948_v18 = vand.u32 4294901760, %v3528_v21 }
  0x5a   :  { %2720 = vmatprep.subr.mxu0 %v3444_v0  ;;  %2643 = vmatprep.mubr.msk.f32.mxu0 %vm3445_vm0, %v3444_v0 }
  0x5b   :  { %2692 = vmatpush3.msra.mxu1 %v397_v49  ;;  %2721 = vmatpush3.msra.mxu0 %v3525_v20  ;;  %v250_v49 = vsub.f32 %v3726_v52, %v3742_v58  ;;  %v3776_v53 = vsub.f32 %v76_v13, %v3759_v3  ;;  %v3802_v29 = vsub.f32 %v77_v63, %v3786_v40  ;;  %v4949_v20 = vand.u32 4294901760, %v3542_v30 }
  0x5c   :  { %2644 = vmatmul.mubr.f32.gmra.mxu0 %v3729_v32  ;;  %2694 = vmatmul.mubr.f32.vlgmr.msra.gmra.mxu1 %v3603_v61 }
  0x5d   :  { %2722 = vmatprep.subr.mxu0 %v3444_v0  ;;  %2767 = vmatprep.subr.mxu1 %v3444_v0  ;;  %v3773_v56 = vand.u32 4294901760, %v250_v49  ;;  %4942 = vst [vmem:[#allocation18_spill] sm:$0xff] %v3776_v53  ;;  %v3793_v13 = vand.u32 4294901760, %v3776_v53  ;;  %v3799_v49 = vand.u32 4294901760, %v260_v46  ;;  %4944 = vst [vmem:[#allocation20_spill] sm:$0xff] %v3802_v29  ;;  %v3817_v46 = vand.u32 4294901760, %v3802_v29 }
  0x5e   :  { %2723 = vmatpush3.msra.mxu0 %v3528_v21  ;;  %2768 = vmatpush3.msra.mxu1 %v3499_v4  ;;  %v4956_v21 = vand.u32 4294901760, %v3630_v31 }
  0x5f   :  { %2724 = vmatprep.subr.mxu0 %v3444_v0  ;;  %2769 = vmatprep.subr.mxu1 %v3444_v0  ;;  %4943 = vst [vmem:[#allocation19_spill] sm:$0xff] %v3793_v13  ;;  %v270_v27 = vsub.f32 %v3776_v53, %v3793_v13  ;;  %4945 = vst [vmem:[#allocation21_spill] sm:$0xff] %v3817_v46  ;;  %v280_v24 = vsub.f32 %v3802_v29, %v3817_v46 }
  0x60   :  { %2646 = vmatprep.mubr.msk.f32.mxu0 %vm3445_vm0, %v3444_v0  ;;  %2725 = vmatpush3.msra.mxu0 %v3542_v30  ;;  %v107_v30 = vld [vmem:[#allocation5 + $0x68] sm:$0xff] }
  0x61   :  { %2770 = vmatpush3.msra.mxu1 %v3501_v5  ;;  %2647 = vmatmul.mubr.f32.gmra.mxu0 %v3748_v2  ;;  %v3823_v63 = vand.u32 4294901760, %v270_v27  ;;  %v3841_v27 = vand.u32 4294901760, %v280_v24  ;;  %v108_v24 = vld [vmem:[#allocation5 + $0x70] sm:$0xff] }
  0x62   :  { %2726 = vmatprep.subr.mxu0 %v3444_v0  ;;  %2771 = vmatprep.subr.mxu1 %v3444_v0 }
  0x63   :  { %2727 = vmatpush3.msra.mxu0 %v3555_v35  ;;  %2772 = vmatpush3.msra.mxu1 %v3503_v6 }
  0x64   :  { %2696 = vmatprep.mubr.msk.f32.mxu1 %vm3445_vm0, %v3444_v0  ;;  %2728 = vmatprep.subr.mxu0 %v3444_v0 }
  0x65   :  { %2773 = vmatprep.subr.mxu1 %v3444_v0  ;;  %2649 = vmatprep.mubr.msk.f32.mxu0 %vm3445_vm0, %v3444_v0 }
  0x66   :  { %2697 = vmatmul.mubr.f32.gmra.mxu1 %v3657_v51  ;;  %2729 = vmatpush3.msra.mxu0 %v3569_v43 }
  0x67   :  { %2774 = vmatpush3.msra.mxu1 %v3505_v10  ;;  %2650 = vmatmul.mubr.f32.gmra.mxu0 %v3773_v56 }
  0x68   :  { %2730 = vmatprep.subr.mxu0 %v3444_v0  ;;  %2775 = vmatprep.subr.mxu1 %v3444_v0 }
  0x69   :  { %2731 = vmatpush3.msra.mxu0 %v3577_v47  ;;  %2776 = vmatpush3.msra.mxu1 %v3507_v11 }
  0x6a   :  { %2699 = vmatprep.mubr.msk.f32.mxu1 %vm3445_vm0, %v3444_v0  ;;  %2732 = vmatprep.subr.mxu0 %v3444_v0 }
  0x6b   :  { %2777 = vmatprep.subr.mxu1 %v3444_v0  ;;  %2652 = vmatprep.mubr.msk.f32.mxu0 %vm3445_vm0, %v3444_v0 }
  0x6c   :  { %2700 = vmatmul.mubr.f32.gmra.mxu1 %v3683_v19  ;;  %2733 = vmatpush3.msra.mxu0 %v3589_v55 }
  0x6d   :  { %2778 = vmatpush3.msra.mxu1 %v3509_v12  ;;  %2653 = vmatmul.mubr.f32.gmra.mxu0 %v3799_v49 }
  0x6e   :  { %2734 = vmatprep.subr.mxu0 %v3444_v0  ;;  %2779 = vmatprep.subr.mxu1 %v3444_v0 }
  0x6f   :  { %2735 = vmatpush3.msra.mxu0 %v3595_v57  ;;  %2780 = vmatpush3.msra.mxu1 %v3518_v17 }
  0x70   :  { %2702 = vmatprep.mubr.msk.f32.mxu1 %vm3445_vm0, %v3444_v0  ;;  %2736 = vmatprep.subr.mxu0 %v3444_v0 }
  0x71   :  { %2781 = vmatprep.subr.mxu1 %v3444_v0  ;;  %2655 = vmatprep.mubr.msk.f32.mxu0 %vm3445_vm0, %v3444_v0 }
  0x72   :  { %2703 = vmatmul.mubr.f32.gmra.mxu1 %v3712_v8  ;;  %2737 = vmatpush3.msra.mxu0 %v3615_v7 }
  0x73   :  { %2782 = vmatpush3.msra.mxu1 %v3534_v25  ;;  %2656 = vmatmul.mubr.f32.gmra.mxu0 %v3823_v63 }
  0x74   :  { %2738 = vmatprep.subr.mxu0 %v3444_v0  ;;  %2783 = vmatprep.subr.mxu1 %v3444_v0 }
  0x75   :  { %2739 = vmatpush3.msra.mxu0 %v3630_v31  ;;  %2784 = vmatpush3.msra.mxu1 %v3538_v28 }
  0x76   :  { %2705 = vmatprep.mubr.msk.f32.mxu1 %vm3445_vm0, %v3444_v0  ;;  %2740 = vmatprep.subr.mxu0 %v3444_v0 }
  0x77   :  { %2785 = vmatprep.subr.mxu1 %v3444_v0  ;;  %2658 = vmatprep.mubr.msk.f32.mxu0 %vm3445_vm0, %v3444_v0 }
  0x78   :  { %2706 = vmatmul.mubr.f32.gmra.mxu1 %v3735_v9  ;;  %2741 = vmatpush3.msra.mxu0 %v3640_v38 }
  0x79   :  { %2786 = vmatpush3.msra.mxu1 %v3558_v36  ;;  %2659 = vmatmul.mubr.f32.gmra.mxu0 %v3841_v27 }
  0x7a   :  { %2742 = vmatprep.subr.mxu0 %v3444_v0  ;;  %2787 = vmatprep.subr.mxu1 %v3444_v0 }
  0x7b   :  { %2743 = vmatpush3.msra.mxu0 %v3655_v50  ;;  %2788 = vmatpush3.msra.mxu1 %v3566_v42 }
  0x7c   :  { %2708 = vmatprep.mubr.msk.f32.mxu1 %vm3445_vm0, %v3444_v0  ;;  %2744 = vmatprep.subr.mxu0 %v3444_v0 }
  0x7d   :  { %2789 = vmatprep.subr.mxu1 %v3444_v0  ;;  %2709 = vmatmul.mubr.f32.gmra.mxu1 %v3759_v3 }
  0x7e   :  { %2745 = vmatpush3.msra.mxu0 %v3669_v1  ;;  %2746 = vmatprep.mubr.msk.f32.mxu0 %vm3445_vm0, %v3444_v0 }
  0x7f   :  { %2790 = vmatpush3.msra.mxu1 %v3581_v48  ;;  %2747 = vmatmul.mubr.f32.vlgmr.msra.gmra.mxu0 %v3627_v26 }
  0x80   :  { %2791 = vmatprep.subr.mxu1 %v3444_v0  ;;  %2820 = vmatprep.subr.mxu0 %v3444_v0 }
  0x81   :  { %2792 = vmatpush3.msra.mxu1 %v3601_v60  ;;  %2821 = vmatpush3.msra.mxu0 %v290_v22  ;;  %v4957_v22 = vand.u32 4294901760, %v3640_v38 }
  0x82   :  { %2711 = vmatprep.mubr.msk.f32.mxu1 %vm3445_vm0, %v3444_v0  ;;  %2793 = vmatprep.subr.mxu1 %v3444_v0 }
  0x83   :  { %2822 = vmatprep.subr.mxu0 %v3444_v0  ;;  %2712 = vmatmul.mubr.f32.gmra.mxu1 %v3786_v40 }
  0x84   :  { %2749 = vmatprep.mubr.msk.f32.mxu0 %vm3445_vm0, %v3444_v0  ;;  %2794 = vmatpush3.msra.mxu1 %v3607_v62 }
  0x85   :  { %2823 = vmatpush3.msra.mxu0 %v297_v23  ;;  %2795 = vmatprep.subr.mxu1 %v3444_v0 }
  0x86   :  { %2750 = vmatmul.mubr.f32.gmra.mxu0 %v3679_v33  ;;  %2824 = vmatprep.subr.mxu0 %v3444_v0 }
  0x87   :  { %2796 = vmatpush3.msra.mxu1 %v3624_v14  ;;  %2825 = vmatpush3.msra.mxu0 %v4946_v15 }
  0x88   :  { %2797 = vmatprep.subr.mxu1 %v3444_v0  ;;  %2826 = vmatprep.subr.mxu0 %v3444_v0 }
  0x89   :  { %2752 = vmatprep.mubr.msk.f32.mxu0 %vm3445_vm0, %v3444_v0  ;;  %2798 = vmatpush3.msra.mxu1 %v3647_v44 }
  0x8a   :  { %2799 = vmatprep.mubr.msk.f32.mxu1 %vm3445_vm0, %v3444_v0  ;;  %2827 = vmatpush3.msra.mxu0 %v4947_v16 }
  0x8b   :  { %2753 = vmatmul.mubr.f32.gmra.mxu0 %v3704_v37  ;;  %2800 = vmatmul.mubr.f32.vlgmr.msra.gmra.mxu1 %v3651_v45 }
  0x8c   :  { %2828 = vmatprep.subr.mxu0 %v3444_v0  ;;  %2873 = vmatprep.subr.mxu1 %v3444_v0 }
  0x8d   :  { %2829 = vmatpush3.msra.mxu0 %v4948_v18  ;;  %2874 = vmatpush3.msra.mxu1 %v3499_v4  ;;  %v4950_v4 = vand.u32 4294901760, %v3555_v35  ;;  %v103_v18 = vld [vmem:[#allocation5 + $0x48] sm:$0xff] }
  0x8e   :  { %2830 = vmatprep.subr.mxu0 %v3444_v0  ;;  %2875 = vmatprep.subr.mxu1 %v3444_v0 }
  0x8f   :  { %2755 = vmatprep.mubr.msk.f32.mxu0 %vm3445_vm0, %v3444_v0  ;;  %2802 = vmatprep.mubr.msk.f32.mxu1 %vm3445_vm0, %v3444_v0 }
  0x90   :  { %2831 = vmatpush3.msra.mxu0 %v4949_v20  ;;  %2876 = vmatpush3.msra.mxu1 %v3501_v5  ;;  %v4951_v5 = vand.u32 4294901760, %v3569_v43  ;;  %v106_v43 = vld [vmem:[#allocation5 + $0x60] sm:$0xff] }
  0x91   :  { %2756 = vmatmul.mubr.f32.gmra.mxu0 %v3726_v52  ;;  %2803 = vmatmul.mubr.f32.gmra.mxu1 %v3699_v54 }
  0x92   :  { %2832 = vmatprep.subr.mxu0 %v3444_v0  ;;  %2877 = vmatprep.subr.mxu1 %v3444_v0 }
  0x93   :  { %2833 = vmatpush3.msra.mxu0 %v4950_v4  ;;  %2878 = vmatpush3.msra.mxu1 %v3503_v6  ;;  %v4952_v6 = vand.u32 4294901760, %v3577_v47 }
  0x94   :  { %2834 = vmatprep.subr.mxu0 %v3444_v0  ;;  %2879 = vmatprep.subr.mxu1 %v3444_v0 }
  0x95   :  { %2758 = vmatprep.mubr.msk.f32.mxu0 %vm3445_vm0, %v3444_v0  ;;  %2805 = vmatprep.mubr.msk.f32.mxu1 %vm3445_vm0, %v3444_v0 }
  0x96   :  { %2835 = vmatpush3.msra.mxu0 %v4951_v5  ;;  %2880 = vmatpush3.msra.mxu1 %v3505_v10  ;;  %v4953_v10 = vand.u32 4294901760, %v3589_v55  ;;  %v4054_v5 = vand.u32 4294901760, %v103_v18 }
  0x97   :  { %2759 = vmatmul.mubr.f32.gmra.mxu0 %v3751_v59  ;;  %2806 = vmatmul.mubr.f32.gmra.mxu1 %v3720_v34 }
  0x98   :  { %2836 = vmatprep.subr.mxu0 %v3444_v0  ;;  %2881 = vmatprep.subr.mxu1 %v3444_v0 }
  0x99   :  { %2837 = vmatpush3.msra.mxu0 %v4952_v6  ;;  %2882 = vmatpush3.msra.mxu1 %v3507_v11  ;;  %v4954_v11 = vand.u32 4294901760, %v3595_v57  ;;  %v105_v57 = vld [vmem:[#allocation5 + $0x58] sm:$0xff]  ;;  %v102_v6 = vld [vmem:[#allocation5 + $0x40] sm:$0xff] }
  0x9a   :  { %2838 = vmatprep.subr.mxu0 %v3444_v0  ;;  %2883 = vmatprep.subr.mxu1 %v3444_v0 }
  0x9b   :  { %2761 = vmatprep.mubr.msk.f32.mxu0 %vm3445_vm0, %v3444_v0  ;;  %2808 = vmatprep.mubr.msk.f32.mxu1 %vm3445_vm0, %v3444_v0 }
  0x9c   :  { %2839 = vmatpush3.msra.mxu0 %v4953_v10  ;;  %2884 = vmatpush3.msra.mxu1 %v3509_v12  ;;  %v4955_v12 = vand.u32 4294901760, %v3615_v7 }
  0x9d   :  { %2762 = vmatmul.mubr.f32.gmra.mxu0 %v3776_v53  ;;  %2809 = vmatmul.mubr.f32.gmra.mxu1 %v3742_v58 }
  0x9e   :  { %2840 = vmatprep.subr.mxu0 %v3444_v0  ;;  %2885 = vmatprep.subr.mxu1 %v3444_v0 }
  0x9f   :  { %2841 = vmatpush3.msra.mxu0 %v4954_v11  ;;  %2886 = vmatpush3.msra.mxu1 %v3518_v17  ;;  %v109_v17 = vld [vmem:[#allocation5 + $0x78] sm:$0xff] }
  0xa0   :  { %2842 = vmatprep.subr.mxu0 %v3444_v0  ;;  %2887 = vmatprep.subr.mxu1 %v3444_v0  ;;  %v3974_v23 = vand.u32 4294901760, %v109_v17 }
  0xa1   :  { %2764 = vmatprep.mubr.msk.f32.mxu0 %vm3445_vm0, %v3444_v0  ;;  %2811 = vmatprep.mubr.msk.f32.mxu1 %vm3445_vm0, %v3444_v0 }
  0xa2   :  { %2843 = vmatpush3.msra.mxu0 %v4955_v12  ;;  %2888 = vmatpush3.msra.mxu1 %v3534_v25  ;;  %v4958_v25 = vand.u32 4294901760, %v3655_v50  ;;  %v3988_v35 = vsub.f32 %v109_v17, %v3974_v23  ;;  %v104_v50 = vld [vmem:[#allocation5 + $0x50] sm:$0xff]  ;;  %v4068_v17 = vand.u32 4294901760, %v102_v6 }
  0xa3   :  { %2765 = vmatmul.mubr.f32.gmra.mxu0 %v3802_v29  ;;  %2812 = vmatmul.mubr.f32.gmra.mxu1 %v3767_v39  ;;  %v4037_v15 = vand.u32 4294901760, %v104_v50 }
  0xa4   :  { %2844 = vmatprep.subr.mxu0 %v3444_v0  ;;  %2889 = vmatprep.subr.mxu1 %v3444_v0  ;;  %v4922_v55 = vand.u32 4294901760, %v3988_v35 }
  0xa5   :  { %2845 = vmatpush3.msra.mxu0 %v4956_v21  ;;  %2890 = vmatpush3.msra.mxu1 %v3538_v28  ;;  %v3983_v28 = vand.u32 4294901760, %v108_v24  ;;  %v4062_v10 = vsub.f32 %v104_v50, %v4037_v15 }
  0xa6   :  { %2846 = vmatprep.subr.mxu0 %v3444_v0  ;;  %2891 = vmatprep.subr.mxu1 %v3444_v0  ;;  %v1190_v38 = vsub.f32 %v3988_v35, %v4922_v55 }
  0xa7   :  { %2814 = vmatprep.mubr.msk.f32.mxu1 %vm3445_vm0, %v3444_v0  ;;  %2847 = vmatpush3.msra.mxu0 %v4957_v22  ;;  %v4002_v47 = vsub.f32 %v108_v24, %v3983_v28  ;;  %v101_v22 = vld [vmem:[#allocation5 + $0x38] sm:$0xff]  ;;  %v4078_v24 = vsub.f32 %v103_v18, %v4054_v5 }
  0xa8   :  { %2892 = vmatpush3.msra.mxu1 %v3558_v36  ;;  %2848 = vmatprep.subr.mxu0 %v3444_v0  ;;  %v4959_v36 = vand.u32 4294901760, %v3669_v1  ;;  %v1191_v20 = vand.u32 4294901760, %v1190_v38  ;;  %v4092_v38 = vsub.f32 %v102_v6, %v4068_v17 }
  0xa9   :  { %2815 = vmatmul.mubr.f32.gmra.mxu1 %v3793_v13  ;;  %2893 = vmatprep.subr.mxu1 %v3444_v0  ;;  %v4920_v31 = vand.u32 4294901760, %v4002_v47  ;;  %v4919_v18 = vand.u32 4294901760, %v4078_v24  ;;  %v94_v13 = vld [vmem:[#allocation5] sm:$0xff] }
  0xaa   :  { %2849 = vmatpush3.msra.mxu0 %v4958_v25  ;;  %2894 = vmatpush3.msra.mxu1 %v3566_v42  ;;  %v3997_v42 = vand.u32 4294901760, %v107_v30  ;;  %v4180_v58 = vand.u32 4294901760, %v94_v13 }
  0xab   :  { %2850 = vmatprep.subr.mxu0 %v3444_v0  ;;  %2895 = vmatprep.subr.mxu1 %v3444_v0  ;;  %v1197_v16 = vsub.f32 %v4002_v47, %v4920_v31 }
  0xac   :  { %2817 = vmatprep.mubr.msk.f32.mxu1 %vm3445_vm0, %v3444_v0  ;;  %2851 = vmatpush3.msra.mxu0 %v4959_v36  ;;  %v4014_v7 = vsub.f32 %v107_v30, %v3997_v42  ;;  %v4916_v30 = vand.u32 4294901760, %v4062_v10  ;;  %v4084_v36 = vand.u32 4294901760, %v101_v22  ;;  %v4197_v34 = vsub.f32 %v94_v13, %v4180_v58 }
  0xad   :  { %2852 = vmatprep.mubr.msk.f32.mxu0 %vm3445_vm0, %v3444_v0  ;;  %2896 = vmatpush3.msra.mxu1 %v3581_v48  ;;  %v4009_v48 = vand.u32 4294901760, %v106_v43  ;;  %v1198_v11 = vand.u32 4294901760, %v1197_v16  ;;  %v99_v16 = vld [vmem:[#allocation5 + $0x28] sm:$0xff] }
  0xae   :  { %2818 = vmatmul.mubr.f32.gmra.mxu1 %v3817_v46  ;;  %2853 = vmatmul.mubr.f32.vlgmr.msra.gmra.mxu0 %v3603_v61  ;;  %v4108_v6 = vsub.f32 %v101_v22, %v4084_v36 }
  0xaf   :  { %2897 = vmatprep.subr.mxu1 %v3444_v0  ;;  %2926 = vmatprep.subr.mxu0 %v3444_v0  ;;  %v4030_v1 = vsub.f32 %v106_v43, %v4009_v48 }
  0xb0   :  { %2898 = vmatpush3.msra.mxu1 %v3601_v60  ;;  %2927 = vmatpush3.msra.mxu0 %v3974_v23  ;;  %v4022_v60 = vand.u32 4294901760, %v105_v57 }
  0xb1   :  { %2899 = vmatprep.subr.mxu1 %v3444_v0  ;;  %2928 = vmatprep.subr.mxu0 %v3444_v0  ;;  %v4917_v4 = vand.u32 4294901760, %v4030_v1 }
  0xb2   :  { %2855 = vmatprep.mubr.msk.f32.mxu0 %vm3445_vm0, %v3444_v0  ;;  %2900 = vmatpush3.msra.mxu1 %v3607_v62  ;;  %v4918_v62 = vand.u32 4294901760, %v4014_v7 }
  0xb3   :  { %2929 = vmatpush3.msra.mxu0 %v3983_v28  ;;  %2901 = vmatprep.subr.mxu1 %v3444_v0  ;;  %v1211_v21 = vsub.f32 %v4030_v1, %v4917_v4  ;;  %v97_v4 = vld [vmem:[#allocation5 + $0x18] sm:$0xff] }
  0xb4   :  { %2856 = vmatmul.mubr.f32.gmra.mxu0 %v3657_v51  ;;  %2930 = vmatprep.subr.mxu0 %v3444_v0  ;;  %v4141_v31 = vand.u32 4294901760, %v97_v4 }
  0xb5   :  { %2902 = vmatpush3.msra.mxu1 %v3624_v14  ;;  %2931 = vmatpush3.msra.mxu0 %v3997_v42  ;;  %v4046_v14 = vsub.f32 %v105_v57, %v4022_v60  ;;  %v100_v57 = vld [vmem:[#allocation5 + $0x30] sm:$0xff]  ;;  %v1212_v50 = vand.u32 4294901760, %v1211_v21  ;;  %v4111_v21 = vand.u32 4294901760, %v99_v16 }
  0xb6   :  { %2903 = vmatprep.subr.mxu1 %v3444_v0  ;;  %2932 = vmatprep.subr.mxu0 %v3444_v0 }
  0xb7   :  { %2858 = vmatprep.mubr.msk.f32.mxu0 %vm3445_vm0, %v3444_v0  ;;  %2904 = vmatpush3.msra.mxu1 %v3647_v44  ;;  %v1204_v44 = vsub.f32 %v4014_v7, %v4918_v62  ;;  %v4915_v12 = vand.u32 4294901760, %v4046_v14  ;;  %v4925_v62 = vand.u32 4294901760, %v4108_v6 }
  0xb8   :  { %2905 = vmatprep.mubr.msk.f32.mxu1 %vm3445_vm0, %v3444_v0  ;;  %2933 = vmatpush3.msra.mxu0 %v4009_v48 }
  0xb9   :  { %2859 = vmatmul.mubr.f32.gmra.mxu0 %v3683_v19  ;;  %2906 = vmatmul.mubr.f32.vlgmr.msra.gmra.mxu1 %v3603_v61  ;;  %v1205_v25 = vand.u32 4294901760, %v1204_v44  ;;  %v1218_v43 = vsub.f32 %v4046_v14, %v4915_v12  ;;  %v1225_v44 = vsub.f32 %v4062_v10, %v4916_v30  ;;  %v4921_v12 = vand.u32 4294901760, %v4092_v38 }
  0xba   :  { %2934 = vmatprep.subr.mxu0 %v3444_v0  ;;  %2979 = vmatprep.subr.mxu1 %v3444_v0  ;;  %v1232_v30 = vsub.f32 %v4078_v24, %v4919_v18  ;;  %v4131_v18 = vsub.f32 %v99_v16, %v4111_v21  ;;  %v1246_v55 = vsub.f32 %v4108_v6, %v4925_v62 }
  0xbb   :  { %2935 = vmatpush3.msra.mxu0 %v4022_v60  ;;  %2980 = vmatpush3.msra.mxu1 %v1191_v20  ;;  %v4098_v20 = vand.u32 4294901760, %v100_v57 }
  0xbc   :  { %2936 = vmatprep.subr.mxu0 %v3444_v0  ;;  %2981 = vmatprep.subr.mxu1 %v3444_v0  ;;  %v4961_v29 = vand.u32 4294901760, %v4131_v18 }
  0xbd   :  { %2861 = vmatprep.mubr.msk.f32.mxu0 %vm3445_vm0, %v3444_v0  ;;  %2908 = vmatprep.mubr.msk.f32.mxu1 %vm3445_vm0, %v3444_v0  ;;  %v4122_v22 = vsub.f32 %v100_v57, %v4098_v20  ;;  %v1239_v57 = vsub.f32 %v4092_v38, %v4921_v12 }
  0xbe   :  { %2937 = vmatpush3.msra.mxu0 %v4037_v15  ;;  %2982 = vmatpush3.msra.mxu1 %v1198_v11  ;;  %v1219_v11 = vand.u32 4294901760, %v1218_v43  ;;  %v1226_v43 = vand.u32 4294901760, %v1225_v44  ;;  %v1233_v44 = vand.u32 4294901760, %v1232_v30  ;;  %v95_v30 = vld [vmem:[#allocation5 + $0x8] sm:$0xff] }
  0xbf   :  { %2862 = vmatmul.mubr.f32.gmra.mxu0 %v3712_v8  ;;  %2909 = vmatmul.mubr.f32.gmra.mxu1 %v3657_v51  ;;  %v4960_v62 = vand.u32 4294901760, %v4122_v22 }
  0xc0   :  { %2938 = vmatprep.subr.mxu0 %v3444_v0  ;;  %2983 = vmatprep.subr.mxu1 %v3444_v0 }
  0xc1   :  { %2939 = vmatpush3.msra.mxu0 %v4054_v5  ;;  %2984 = vmatpush3.msra.mxu1 %v1205_v25  ;;  %v98_v25 = vld [vmem:[#allocation5 + $0x20] sm:$0xff]  ;;  %v1253_v39 = vsub.f32 %v4122_v22, %v4960_v62  ;;  %v1260_v62 = vsub.f32 %v4131_v18, %v4961_v29 }
  0xc2   :  { %2940 = vmatprep.subr.mxu0 %v3444_v0  ;;  %2985 = vmatprep.subr.mxu1 %v3444_v0 }
  0xc3   :  { %2864 = vmatprep.mubr.msk.f32.mxu0 %vm3445_vm0, %v3444_v0  ;;  %2911 = vmatprep.mubr.msk.f32.mxu1 %vm3445_vm0, %v3444_v0  ;;  %v1261_v53 = vand.u32 4294901760, %v1260_v62 }
  0xc4   :  { %2941 = vmatpush3.msra.mxu0 %v4068_v17  ;;  %2986 = vmatpush3.msra.mxu1 %v1212_v50  ;;  %v4125_v50 = vand.u32 4294901760, %v98_v25 }
  0xc5   :  { %2865 = vmatmul.mubr.f32.gmra.mxu0 %v3735_v9  ;;  %2912 = vmatmul.mubr.f32.gmra.mxu1 %v3683_v19 }
  0xc6   :  { %2942 = vmatprep.subr.mxu0 %v3444_v0  ;;  %2987 = vmatprep.subr.mxu1 %v3444_v0  ;;  %v4147_v12 = vsub.f32 %v98_v25, %v4125_v50  ;;  %v4161_v25 = vsub.f32 %v97_v4, %v4141_v31 }
  0xc7   :  { %2943 = vmatpush3.msra.mxu0 %v4084_v36  ;;  %2988 = vmatpush3.msra.mxu1 %v1219_v11  ;;  %v96_v11 = vld [vmem:[#allocation5 + $0x10] sm:$0xff] }
  0xc8   :  { %2944 = vmatprep.subr.mxu0 %v3444_v0  ;;  %2989 = vmatprep.subr.mxu1 %v3444_v0  ;;  %v4154_v46 = vand.u32 4294901760, %v96_v11  ;;  %v1266_v16 = vand.u32 4294901760, %v4147_v12 }
  0xc9   :  { %2867 = vmatprep.mubr.msk.f32.mxu0 %vm3445_vm0, %v3444_v0  ;;  %2914 = vmatprep.mubr.msk.f32.mxu1 %vm3445_vm0, %v3444_v0 }
  0xca   :  { %2945 = vmatpush3.msra.mxu0 %v4098_v20  ;;  %2990 = vmatpush3.msra.mxu1 %v1226_v43  ;;  %v1240_v43 = vand.u32 4294901760, %v1239_v57  ;;  %v4166_v57 = vand.u32 4294901760, %v95_v30  ;;  %v4175_v4 = vsub.f32 %v96_v11, %v4154_v46  ;;  %v4931_v11 = vand.u32 4294901760, %v4161_v25 }
  0xcb   :  { %2868 = vmatmul.mubr.f32.gmra.mxu0 %v3759_v3  ;;  %2915 = vmatmul.mubr.f32.gmra.mxu1 %v3712_v8  ;;  %v1267_v29 = vsub.f32 %v4147_v12, %v1266_v16 }
  0xcc   :  { %2946 = vmatprep.subr.mxu0 %v3444_v0  ;;  %2991 = vmatprep.subr.mxu1 %v3444_v0 }
  0xcd   :  { %2947 = vmatpush3.msra.mxu0 %v4111_v21  ;;  %2992 = vmatpush3.msra.mxu1 %v1233_v44  ;;  %v1247_v44 = vand.u32 4294901760, %v1246_v55  ;;  %v1254_v55 = vand.u32 4294901760, %v1253_v39  ;;  %v4932_v39 = vand.u32 4294901760, %v4175_v4  ;;  %v1268_v13 = vand.u32 4294901760, %v1267_v29 }
  0xce   :  { %2948 = vmatprep.subr.mxu0 %v3444_v0  ;;  %2993 = vmatprep.subr.mxu1 %v3444_v0 }
  0xcf   :  { %2870 = vmatprep.mubr.msk.f32.mxu0 %vm3445_vm0, %v3444_v0  ;;  %2917 = vmatprep.mubr.msk.f32.mxu1 %vm3445_vm0, %v3444_v0  ;;  %v1281_v62 = vsub.f32 %v4175_v4, %v4932_v39 }
  0xd0   :  { %2949 = vmatpush3.msra.mxu0 %v4125_v50  ;;  %2994 = vmatpush3.msra.mxu1 %v1240_v43  ;;  %v4187_v43 = vsub.f32 %v95_v30, %v4166_v57  ;;  %v1274_v30 = vsub.f32 %v4161_v25, %v4931_v11 }
  0xd1   :  { %2871 = vmatmul.mubr.f32.gmra.mxu0 %v3786_v40  ;;  %2918 = vmatmul.mubr.f32.gmra.mxu1 %v3735_v9  ;;  %v1282_v29 = vand.u32 4294901760, %v1281_v62  ;;  %v4968_v62 = vand.u32 4294901760, %v4078_v24 }
  0xd2   :  { %2950 = vmatprep.subr.mxu0 %v3444_v0  ;;  %2995 = vmatprep.subr.mxu1 %v3444_v0  ;;  %v1275_v11 = vand.u32 4294901760, %v1274_v30 }
  0xd3   :  { %2951 = vmatpush3.msra.mxu0 %v4141_v31  ;;  %2996 = vmatpush3.msra.mxu1 %v1247_v44  ;;  %v1287_v44 = vand.u32 4294901760, %v4187_v43 }
  0xd4   :  { %2952 = vmatprep.subr.mxu0 %v3444_v0  ;;  %2997 = vmatprep.subr.mxu1 %v3444_v0 }
  0xd5   :  { %2920 = vmatprep.mubr.msk.f32.mxu1 %vm3445_vm0, %v3444_v0  ;;  %2953 = vmatpush3.msra.mxu0 %v4154_v46 }
  0xd6   :  { %2998 = vmatpush3.msra.mxu1 %v1254_v55  ;;  %2954 = vmatprep.subr.mxu0 %v3444_v0  ;;  %v1294_v55 = vand.u32 4294901760, %v4197_v34 }
  0xd7   :  { %2921 = vmatmul.mubr.f32.gmra.mxu1 %v3759_v3  ;;  %2999 = vmatprep.subr.mxu1 %v3444_v0 }
  0xd8   :  { %2955 = vmatpush3.msra.mxu0 %v4166_v57  ;;  %3000 = vmatpush3.msra.mxu1 %v1261_v53  ;;  %v1288_v53 = vsub.f32 %v4187_v43, %v1287_v44  ;;  %v1295_v39 = vsub.f32 %v4197_v34, %v1294_v55 }
  0xd9   :  { %2956 = vmatprep.subr.mxu0 %v3444_v0  ;;  %3001 = vmatprep.subr.mxu1 %v3444_v0 }
  0xda   :  { %2923 = vmatprep.mubr.msk.f32.mxu1 %vm3445_vm0, %v3444_v0  ;;  %2957 = vmatpush3.msra.mxu0 %v4180_v58  ;;  %v1289_v30 = vand.u32 4294901760, %v1288_v53 }
  0xdb   :  { %3002 = vmatpush3.msra.mxu1 %v1268_v13  ;;  %2958 = vmatprep.mubr.msk.f32.mxu0 %vm3445_vm0, %v3444_v0  ;;  %v1296_v13 = vand.u32 4294901760, %v1295_v39 }
  0xdc   :  { %2924 = vmatmul.mubr.f32.gmra.mxu1 %v3786_v40  ;;  %3003 = vmatprep.subr.mxu1 %v3444_v0 }
  0xdd   :  { %3032 = vmatprep.subr.mxu0 %v3444_v0  ;;  %2959 = vmatmul.mubr.f32.vlgmr.msra.gmra.mxu0 %v3693_v41 }
  0xde   :  { %3004 = vmatpush3.msra.mxu1 %v1275_v11  ;;  %3033 = vmatpush3.msra.mxu0 %v3988_v35  ;;  %v4966_v11 = vand.u32 4294901760, %v4046_v14 }
  0xdf   :  { %3005 = vmatprep.subr.mxu1 %v3444_v0  ;;  %3034 = vmatprep.subr.mxu0 %v3444_v0 }
  0xe0   :  { %3006 = vmatpush3.msra.mxu1 %v1282_v29  ;;  %3035 = vmatpush3.msra.mxu0 %v4002_v47  ;;  %v3327_v29 = vld [vmem:[#allocation8 + $0x20] sm:$0xff] }
  0xe1   :  { %3007 = vmatprep.subr.mxu1 %v3444_v0  ;;  %3036 = vmatprep.subr.mxu0 %v3444_v0 }
  0xe2   :  { %3008 = vmatpush3.msra.mxu1 %v1289_v30  ;;  %3037 = vmatpush3.msra.mxu0 %v4014_v7  ;;  %v119_v30 = vmul.f32 %v3327_v29, %v3327_v29 }
  0xe3   :  { %3009 = vmatprep.subr.mxu1 %v3444_v0  ;;  %3038 = vmatprep.subr.mxu0 %v3444_v0 }
  0xe4   :  { %2961 = vmatprep.mubr.msk.f32.mxu0 %vm3445_vm0, %v3444_v0  ;;  %3010 = vmatpush3.msra.mxu1 %v1296_v13  ;;  %v4973_v13 = vld [vmem:[#allocation18_spill] sm:$0xff] }
  0xe5   :  { %3011 = vmatprep.mubr.msk.f32.mxu1 %vm3445_vm0, %v3444_v0  ;;  %3039 = vmatpush3.msra.mxu0 %v4030_v1 }
  0xe6   :  { %2962 = vmatmul.mubr.f32.gmra.mxu0 %v3729_v32  ;;  %3012 = vmatmul.mubr.f32.vlgmr.msra.gmra.mxu1 %v3603_v61  ;;  %v3323_v32 = vld [vmem:[#allocation8] sm:$0xff] }
  0xe7   :  { %3040 = vmatprep.subr.mxu0 %v3444_v0  ;;  %3085 = vmatprep.subr.mxu1 %v3444_v0  ;;  %v115_v41 = vmul.f32 %v3323_v32, %v3323_v32 }
  0xe8   :  { %3041 = vmatpush3.msra.mxu0 %v4046_v14  ;;  %3086 = vmatpush3.msra.mxu1 %v3974_v23 }
  0xe9   :  { %3042 = vmatprep.subr.mxu0 %v3444_v0  ;;  %3087 = vmatprep.subr.mxu1 %v3444_v0 }
  0xea   :  { %2964 = vmatprep.mubr.msk.f32.mxu0 %vm3445_vm0, %v3444_v0  ;;  %3043 = vmatpush3.msra.mxu0 %v4062_v10 }
  0xeb   :  { %3088 = vmatpush3.msra.mxu1 %v3983_v28  ;;  %2965 = vmatmul.mubr.f32.gmra.mxu0 %v3748_v2  ;;  %v3324_v2 = vld [vmem:[#allocation8 + $0x8] sm:$0xff] }
  0xec   :  { %3044 = vmatprep.subr.mxu0 %v3444_v0  ;;  %3089 = vmatprep.subr.mxu1 %v3444_v0 }
  0xed   :  { %3045 = vmatpush3.msra.mxu0 %v4078_v24  ;;  %3090 = vmatpush3.msra.mxu1 %v3997_v42  ;;  %v4971_v24 = vand.u32 4294901760, %v4108_v6 }
  0xee   :  { %3014 = vmatprep.mubr.msk.f32.mxu1 %vm3445_vm0, %v3444_v0  ;;  %3046 = vmatprep.subr.mxu0 %v3444_v0 }
  0xef   :  { %3091 = vmatprep.subr.mxu1 %v3444_v0  ;;  %2967 = vmatprep.mubr.msk.f32.mxu0 %vm3445_vm0, %v3444_v0 }
  0xf0   :  { %3015 = vmatmul.mubr.f32.gmra.mxu1 %v3657_v51  ;;  %3047 = vmatpush3.msra.mxu0 %v4092_v38 }
  0xf1   :  { %3092 = vmatpush3.msra.mxu1 %v4009_v48  ;;  %2968 = vmatmul.mubr.f32.gmra.mxu0 %v3773_v56  ;;  %v4962_v56 = vand.u32 4294901760, %v3988_v35  ;;  %v3325_v35 = vld [vmem:[#allocation8 + $0x10] sm:$0xff] }
  0xf2   :  { %3048 = vmatprep.subr.mxu0 %v3444_v0  ;;  %3093 = vmatprep.subr.mxu1 %v3444_v0 }
  0xf3   :  { %3049 = vmatpush3.msra.mxu0 %v4108_v6  ;;  %3094 = vmatpush3.msra.mxu1 %v4022_v60  ;;  %v4972_v6 = vand.u32 4294901760, %v4122_v22 }
  0xf4   :  { %3017 = vmatprep.mubr.msk.f32.mxu1 %vm3445_vm0, %v3444_v0  ;;  %3050 = vmatprep.subr.mxu0 %v3444_v0 }
  0xf5   :  { %3095 = vmatprep.subr.mxu1 %v3444_v0  ;;  %2970 = vmatprep.mubr.msk.f32.mxu0 %vm3445_vm0, %v3444_v0 }
  0xf6   :  { %3018 = vmatmul.mubr.f32.gmra.mxu1 %v3683_v19  ;;  %3051 = vmatpush3.msra.mxu0 %v4122_v22 }
  0xf7   :  { %3096 = vmatpush3.msra.mxu1 %v4037_v15  ;;  %2971 = vmatmul.mubr.f32.gmra.mxu0 %v3799_v49  ;;  %v116_v49 = vmul.f32 %v3324_v2, %v3324_v2  ;;  %v4975_v2 = vand.u32 4294901760, %v4131_v18 }
  0xf8   :  { %3052 = vmatprep.subr.mxu0 %v3444_v0  ;;  %3097 = vmatprep.subr.mxu1 %v3444_v0 }
  0xf9   :  { %3053 = vmatpush3.msra.mxu0 %v4131_v18  ;;  %3098 = vmatpush3.msra.mxu1 %v4054_v5  ;;  %v4976_v18 = vld [vmem:[#allocation20_spill] sm:$0xff] }
  0xfa   :  { %3020 = vmatprep.mubr.msk.f32.mxu1 %vm3445_vm0, %v3444_v0  ;;  %3054 = vmatprep.subr.mxu0 %v3444_v0 }
  0xfb   :  { %3099 = vmatprep.subr.mxu1 %v3444_v0  ;;  %2973 = vmatprep.mubr.msk.f32.mxu0 %vm3445_vm0, %v3444_v0 }
  0xfc   :  { %3021 = vmatmul.mubr.f32.gmra.mxu1 %v3712_v8  ;;  %3055 = vmatpush3.msra.mxu0 %v4147_v12 }
  0xfd   :  { %3100 = vmatpush3.msra.mxu1 %v4068_v17  ;;  %2974 = vmatmul.mubr.f32.gmra.mxu0 %v3823_v63  ;;  %v4964_v63 = vand.u32 4294901760, %v4014_v7 }
  0xfe   :  { %3056 = vmatprep.subr.mxu0 %v3444_v0  ;;  %3101 = vmatprep.subr.mxu1 %v3444_v0 }
  0xff   :  { %3057 = vmatpush3.msra.mxu0 %v4161_v25  ;;  %3102 = vmatpush3.msra.mxu1 %v4084_v36 }
 0x100   :  { %3023 = vmatprep.mubr.msk.f32.mxu1 %vm3445_vm0, %v3444_v0  ;;  %3058 = vmatprep.subr.mxu0 %v3444_v0 }
 0x101   :  { %3103 = vmatprep.subr.mxu1 %v3444_v0  ;;  %2976 = vmatprep.mubr.msk.f32.mxu0 %vm3445_vm0, %v3444_v0 }
 0x102   :  { %3024 = vmatmul.mubr.f32.gmra.mxu1 %v3735_v9  ;;  %3059 = vmatpush3.msra.mxu0 %v4175_v4 }
 0x103   :  { %3104 = vmatpush3.msra.mxu1 %v4098_v20  ;;  %2977 = vmatmul.mubr.f32.gmra.mxu0 %v3841_v27  ;;  %v4965_v27 = vand.u32 4294901760, %v4030_v1 }
 0x104   :  { %3060 = vmatprep.subr.mxu0 %v3444_v0  ;;  %3105 = vmatprep.subr.mxu1 %v3444_v0 }
 0x105   :  { %3061 = vmatpush3.msra.mxu0 %v4187_v43  ;;  %3106 = vmatpush3.msra.mxu1 %v4111_v21 }
 0x106   :  { %3026 = vmatprep.mubr.msk.f32.mxu1 %vm3445_vm0, %v3444_v0  ;;  %3062 = vmatprep.subr.mxu0 %v3444_v0 }
 0x107   :  { %3107 = vmatprep.subr.mxu1 %v3444_v0  ;;  %3027 = vmatmul.mubr.f32.gmra.mxu1 %v3759_v3 }
 0x108   :  { %3063 = vmatpush3.msra.mxu0 %v4197_v34  ;;  %3064 = vmatprep.mubr.msk.f32.mxu0 %vm3445_vm0, %v3444_v0 }
 0x109   :  { %3108 = vmatpush3.msra.mxu1 %v4125_v50  ;;  %3065 = vmatmul.mubr.f32.vlgmr.msra.gmra.mxu0 %v3627_v26  ;;  %v4963_v26 = vand.u32 4294901760, %v4002_v47  ;;  %v117_v47 = vmul.f32 %v3325_v35, %v3325_v35 }
 0x10a   :  { %3109 = vmatprep.subr.mxu1 %v3444_v0  ;;  %3138 = vmatprep.subr.mxu0 %v3444_v0 }
 0x10b   :  { %3110 = vmatpush3.msra.mxu1 %v4141_v31  ;;  %3139 = vmatpush3.msra.mxu0 %v4962_v56  ;;  %v3328_v56 = vld [vmem:[#allocation8 + $0x28] sm:$0xff] }
 0x10c   :  { %3029 = vmatprep.mubr.msk.f32.mxu1 %vm3445_vm0, %v3444_v0  ;;  %3111 = vmatprep.subr.mxu1 %v3444_v0  ;;  %v120_v32 = vmul.f32 %v3328_v56, %v3328_v56 }
 0x10d   :  { %3140 = vmatprep.subr.mxu0 %v3444_v0  ;;  %3030 = vmatmul.mubr.f32.gmra.mxu1 %v3786_v40 }
 0x10e   :  { %3067 = vmatprep.mubr.msk.f32.mxu0 %vm3445_vm0, %v3444_v0  ;;  %3112 = vmatpush3.msra.mxu1 %v4154_v46 }
 0x10f   :  { %3141 = vmatpush3.msra.mxu0 %v4963_v26  ;;  %122 = vadd.xlane.f32.xlu0 %v115_v41  ;;  %v4974_v26 = vld [vmem:[#allocation16_spill] sm:$0xff] }
 0x110   :  { %3068 = vmatmul.mubr.f32.gmra.mxu0 %v3679_v33  ;;  %3113 = vmatprep.subr.mxu1 %v3444_v0 }
 0x111   :  { %3142 = vmatprep.subr.mxu0 %v3444_v0  ;;  %3114 = vmatpush3.msra.mxu1 %v4166_v57 }
 0x112   :  { %3143 = vmatpush3.msra.mxu0 %v4964_v63  ;;  %3115 = vmatprep.subr.mxu1 %v3444_v0 }
 0x113   :  { %3144 = vmatprep.subr.mxu0 %v3444_v0  ;;  %3070 = vmatprep.mubr.msk.f32.mxu0 %vm3445_vm0, %v3444_v0 }
 0x114   :  { %3116 = vmatpush3.msra.mxu1 %v4180_v58  ;;  %3117 = vmatprep.mubr.msk.f32.mxu1 %vm3445_vm0, %v3444_v0  ;;  %v223_v33 = vpop.f32.mrf.mxu0 }
 0x115   :  { %3145 = vmatpush3.msra.mxu0 %v4965_v27  ;;  %124 = vadd.xlane.f32.xlu0 %v116_v49  ;;  %v3329_v27 = vld [vmem:[#allocation8 + $0x30] sm:$0xff] }
 0x116   :  { %3071 = vmatmul.mubr.f32.gmra.mxu0 %v3704_v37  ;;  %3118 = vmatmul.mubr.f32.vlgmr.msra.gmra.mxu1 %v3651_v45  ;;  %v2642_v7 = vpop.f32.mrf.mxu0  ;;  %v4967_v37 = vand.u32 4294901760, %v4062_v10  ;;  %v3326_v45 = vld [vmem:[#allocation8 + $0x18] sm:$0xff]  ;;  %v121_v35 = vmul.f32 %v3329_v27, %v3329_v27 }
 0x117   :  { %3146 = vmatprep.subr.mxu0 %v3444_v0  ;;  %3191 = vmatprep.subr.mxu1 %v3444_v0  ;;  %v4979_v7 = vand.u32 4294901760, %v4175_v4 }
 0x118   :  { %3147 = vmatpush3.msra.mxu0 %v4966_v11  ;;  %3192 = vmatpush3.msra.mxu1 %v3974_v23  ;;  %v118_v23 = vmul.f32 %v3326_v45, %v3326_v45 }
 0x119   :  { %3148 = vmatprep.subr.mxu0 %v3444_v0  ;;  %3193 = vmatprep.subr.mxu1 %v3444_v0 }
 0x11a   :  { %126 = vadd.xlane.f32.xlu1 %v117_v47  ;;  %3073 = vmatprep.mubr.msk.f32.mxu0 %vm3445_vm0, %v3444_v0  ;;  %v4978_v47 = vand.u32 4294901760, %v4161_v25 }
 0x11b   :  { %3120 = vmatprep.mubr.msk.f32.mxu1 %vm3445_vm0, %v3444_v0  ;;  %3149 = vmatpush3.msra.mxu0 %v4967_v37 }
 0x11c   :  { %3194 = vmatpush3.msra.mxu1 %v3983_v28  ;;  %3074 = vmatmul.mubr.f32.gmra.mxu0 %v3726_v52  ;;  %v233_v1 = vpop.f32.mrf.mxu0  ;;  %v434_v14 = vpop.f32.mrf.mxu1  ;;  %v4969_v52 = vand.u32 4294901760, %v4092_v38  ;;  %v4970_v28 = vld [vmem:[#allocation15_spill] sm:$0xff] }
 0x11d   :  { %3121 = vmatmul.mubr.f32.gmra.mxu1 %v3699_v54  ;;  %3150 = vmatprep.subr.mxu0 %v3444_v0  ;;  %v4378_v39 = vadd.f32 %v434_v14, %v223_v33  ;;  %v4977_v33 = vld [vmem:[#allocation17_spill] sm:$0xff] }
 0x11e   :  { %3195 = vmatprep.subr.mxu1 %v3444_v0  ;;  %3151 = vmatpush3.msra.mxu0 %v4968_v62  ;;  %v2645_v10 = vpop.f32.mrf.mxu0  ;;  %v2695_v53 = vpop.f32.mrf.mxu1 }
 0x11f   :  { %3196 = vmatpush3.msra.mxu1 %v3997_v42  ;;  %3152 = vmatprep.subr.mxu0 %v3444_v0 }
 0x120   :  { %3197 = vmatprep.subr.mxu1 %v3444_v0  ;;  %128 = vadd.xlane.f32.xlu1 %v118_v23 }
 0x121   :  { %3076 = vmatprep.mubr.msk.f32.mxu0 %vm3445_vm0, %v3444_v0  ;;  %3123 = vmatprep.mubr.msk.f32.mxu1 %vm3445_vm0, %v3444_v0  ;;  %v243_v54 = vpop.f32.mrf.mxu0 }
 0x122   :  { %3153 = vmatpush3.msra.mxu0 %v4969_v52  ;;  %3198 = vmatpush3.msra.mxu1 %v4009_v48 }
 0x123   :  { %3077 = vmatmul.mubr.f32.gmra.mxu0 %v3751_v59  ;;  %3124 = vmatmul.mubr.f32.gmra.mxu1 %v4970_v28  ;;  %v2648_v42 = vpop.f32.mrf.mxu0 }
 0x124   :  { %3154 = vmatprep.subr.mxu0 %v3444_v0  ;;  %3199 = vmatprep.subr.mxu1 %v3444_v0 }
 0x125   :  { %3155 = vmatpush3.msra.mxu0 %v4971_v24  ;;  %3200 = vmatpush3.msra.mxu1 %v4022_v60 }
 0x126   :  { %3156 = vmatprep.subr.mxu0 %v3444_v0  ;;  %3201 = vmatprep.subr.mxu1 %v3444_v0  ;;  %v440_v48 = vpop.f32.mrf.mxu1 }
 0x127   :  { %3079 = vmatprep.mubr.msk.f32.mxu0 %vm3445_vm0, %v3444_v0  ;;  %3126 = vmatprep.mubr.msk.f32.mxu1 %vm3445_vm0, %v3444_v0  ;;  %v4406_v59 = vadd.f32 %v440_v48, %v233_v1  ;;  %v253_v38 = vpop.f32.mrf.mxu0 }
 0x128   :  { %3157 = vmatpush3.msra.mxu0 %v4972_v6  ;;  %3202 = vmatpush3.msra.mxu1 %v4037_v15  ;;  %v2698_v60 = vpop.f32.mrf.mxu1 }
 0x129   :  { %130 = vadd.xlane.f32.xlu0 %v119_v30  ;;  %3080 = vmatmul.mubr.f32.gmra.mxu0 %v4973_v13  ;;  %v2651_v41 = vpop.f32.mrf.mxu0 }
 0x12a   :  { %3127 = vmatmul.mubr.f32.gmra.mxu1 %v4974_v26  ;;  %3158 = vmatprep.subr.mxu0 %v3444_v0 }
 0x12b   :  { %3203 = vmatprep.subr.mxu1 %v3444_v0  ;;  %3159 = vmatpush3.msra.mxu0 %v4975_v2 }
 0x12c   :  { %3204 = vmatpush3.msra.mxu1 %v4054_v5  ;;  %3160 = vmatprep.subr.mxu0 %v3444_v0  ;;  %v446_v15 = vpop.f32.mrf.mxu1 }
 0x12d   :  { %3205 = vmatprep.subr.mxu1 %v3444_v0  ;;  %132 = vadd.xlane.f32.xlu1 %v120_v32  ;;  %v4420_v22 = vadd.f32 %v446_v15, %v243_v54  ;;  %v263_v49 = vpop.f32.mrf.mxu0 }
 0x12e   :  { %3082 = vmatprep.mubr.msk.f32.mxu0 %vm3445_vm0, %v3444_v0  ;;  %3129 = vmatprep.mubr.msk.f32.mxu1 %vm3445_vm0, %v3444_v0  ;;  %v2701_v63 = vpop.f32.mrf.mxu1 }
 0x12f   :  { %3161 = vmatpush3.msra.mxu0 %v1266_v16  ;;  %3206 = vmatpush3.msra.mxu1 %v4068_v17  ;;  %v2654_v5 = vpop.f32.mrf.mxu0 }
 0x130   :  { %3083 = vmatmul.mubr.f32.gmra.mxu0 %v4976_v18  ;;  %3130 = vmatmul.mubr.f32.gmra.mxu1 %v4977_v33 }
 0x131   :  { %3162 = vmatprep.subr.mxu0 %v3444_v0  ;;  %3207 = vmatprep.subr.mxu1 %v3444_v0 }
 0x132   :  { %3163 = vmatpush3.msra.mxu0 %v4978_v47  ;;  %3208 = vmatpush3.msra.mxu1 %v4084_v36  ;;  %v452_v12 = vpop.f32.mrf.mxu1  ;;  %v4980_v36 = vld [vmem:[#allocation19_spill] sm:$0xff] }
 0x133   :  { %3164 = vmatprep.subr.mxu0 %v3444_v0  ;;  %3209 = vmatprep.subr.mxu1 %v3444_v0  ;;  %v4438_v17 = vadd.f32 %v452_v12, %v253_v38  ;;  %v273_v16 = vpop.f32.mrf.mxu0 }
 0x134   :  { %3132 = vmatprep.mubr.msk.f32.mxu1 %vm3445_vm0, %v3444_v0  ;;  %3165 = vmatpush3.msra.mxu0 %v4979_v7  ;;  %v2704_v11 = vpop.f32.mrf.mxu1 }
 0x135   :  { %3210 = vmatpush3.msra.mxu1 %v4098_v20  ;;  %134 = vadd.xlane.f32.xlu0 %v121_v35  ;;  %v2657_v25 = vpop.f32.mrf.mxu0 }
 0x136   :  { %3133 = vmatmul.mubr.f32.gmra.mxu1 %v4980_v36  ;;  %3166 = vmatprep.subr.mxu0 %v3444_v0 }
 0x137   :  { %3211 = vmatprep.subr.mxu1 %v3444_v0  ;;  %3167 = vmatpush3.msra.mxu0 %v1287_v44  ;;  %v4981_v44 = vld [vmem:[#allocation21_spill] sm:$0xff] }
 0x138   :  { %3212 = vmatpush3.msra.mxu1 %v4111_v21  ;;  %3168 = vmatprep.subr.mxu0 %v3444_v0  ;;  %v458_v4 = vpop.f32.mrf.mxu1 }
 0x139   :  { %3213 = vmatprep.subr.mxu1 %v3444_v0  ;;  %3135 = vmatprep.mubr.msk.f32.mxu1 %vm3445_vm0, %v3444_v0  ;;  %v4455_v20 = vadd.f32 %v458_v4, %v263_v49  ;;  %v283_v37 = vpop.f32.mrf.mxu0 }
 0x13a   :  { %3169 = vmatpush3.msra.mxu0 %v1294_v55  ;;  %3170 = vmatprep.mubr.msk.f32.mxu0 %vm3445_vm0, %v3444_v0  ;;  %v2707_v43 = vpop.f32.mrf.mxu1 }
 0x13b   :  { %3214 = vmatpush3.msra.mxu1 %v4125_v50  ;;  %3171 = vmatmul.mubr.f32.vlgmr.msra.gmra.mxu0 %v3603_v61  ;;  %v2660_v21 = vpop.f32.mrf.mxu0 }
 0x13c   :  { %3136 = vmatmul.mubr.f32.gmra.mxu1 %v4981_v44  ;;  %3215 = vmatprep.subr.mxu1 %v3444_v0 }
 0x13d   :  { %3216 = vmatpush3.msra.mxu1 %v4141_v31  ;;  %3173 = vmatprep.mubr.msk.f32.mxu0 %vm3445_vm0, %v3444_v0  ;;  %v464_v34 = vpop.f32.mrf.mxu1 }
 0x13e   :  { %3217 = vmatprep.subr.mxu1 %v3444_v0  ;;  %3223 = vmatprep.mubr.msk.f32.mxu1 %vm3445_vm0, %v3444_v0  ;;  %v465_v55 = vadd.f32 %v464_v34, %v273_v16 }
 0x13f   :  { %3218 = vmatpush3.msra.mxu1 %v4154_v46  ;;  %3174 = vmatmul.mubr.f32.gmra.mxu0 %v3657_v51  ;;  %v574_v50 = vpop.f32.mrf.mxu0  ;;  %v2710_v45 = vpop.f32.mrf.mxu1 }
 0x140   :  { %3219 = vmatprep.subr.mxu1 %v3444_v0  ;;  %3176 = vmatprep.mubr.msk.f32.mxu0 %vm3445_vm0, %v3444_v0  ;;  %v575_v31 = vadd.f32 %v574_v50, %v4378_v39 }
 0x141   :  { %3220 = vmatpush3.msra.mxu1 %v4166_v57  ;;  %v2748_v23 = vpop.f32.mrf.mxu0 }
 0x142   :  { %3221 = vmatprep.subr.mxu1 %v3444_v0 }
 0x143   :  { %3222 = vmatpush3.msra.mxu1 %v4180_v58  ;;  %3177 = vmatmul.mubr.f32.gmra.mxu0 %v3683_v19  ;;  %v470_v46 = vpop.f32.mrf.mxu1 }
 0x144   :  { %3224 = vmatmul.mubr.f32.vlgmr.msra.gmra.mxu1 %v3603_v61  ;;  %3179 = vmatprep.mubr.msk.f32.mxu0 %vm3445_vm0, %v3444_v0  ;;  %v471_v1 = vadd.f32 %v470_v46, %v283_v37 }
 0x145   :  { %3226 = vmatprep.mubr.msk.f32.mxu1 %vm3445_vm0, %v3444_v0  ;;  %v2713_v14 = vpop.f32.mrf.mxu1 }
 0x146   :  { %v581_v39 = vpop.f32.mrf.mxu0 }
 0x147   :  { %3180 = vmatmul.mubr.f32.gmra.mxu0 %v3712_v8  ;;  %v582_v57 = vadd.f32 %v581_v39, %v4406_v59 }
 0x148   :  { %3227 = vmatmul.mubr.f32.gmra.mxu1 %v3657_v51  ;;  %3182 = vmatprep.mubr.msk.f32.mxu0 %vm3445_vm0, %v3444_v0  ;;  %v2751_v58 = vpop.f32.mrf.mxu0 }
 0x149   :  { %3229 = vmatprep.mubr.msk.f32.mxu1 %vm3445_vm0, %v3444_v0 }
 0x14b   :  { %3183 = vmatmul.mubr.f32.gmra.mxu0 %v3735_v9  ;;  %v588_v61 = vpop.f32.mrf.mxu0  ;;  %v705_v62 = vpop.f32.mrf.mxu1 }
 0x14c   :  { %3230 = vmatmul.mubr.f32.gmra.mxu1 %v3683_v19  ;;  %3185 = vmatprep.mubr.msk.f32.mxu0 %vm3445_vm0, %v3444_v0  ;;  %v589_v10 = vadd.f32 %v588_v61, %v4420_v22  ;;  %v706_v53 = vadd.f32 %v705_v62, %v575_v31 }
 0x14d   :  { %3232 = vmatprep.mubr.msk.f32.mxu1 %vm3445_vm0, %v3444_v0  ;;  %v2754_v51 = vpop.f32.mrf.mxu0  ;;  %v2801_v54 = vpop.f32.mrf.mxu1 }
 0x14f   :  { %3186 = vmatmul.mubr.f32.gmra.mxu0 %v3759_v3 }
 0x150   :  { %3233 = vmatmul.mubr.f32.gmra.mxu1 %v3712_v8  ;;  %3188 = vmatprep.mubr.msk.f32.mxu0 %vm3445_vm0, %v3444_v0 }
 0x151   :  { %3235 = vmatprep.mubr.msk.f32.mxu1 %vm3445_vm0, %v3444_v0  ;;  %v595_v19 = vpop.f32.mrf.mxu0  ;;  %v713_v52 = vpop.f32.mrf.mxu1 }
 0x152   :  { %v596_v28 = vadd.f32 %v595_v19, %v4438_v17  ;;  %v714_v42 = vadd.f32 %v713_v52, %v582_v57 }
 0x153   :  { %3189 = vmatmul.mubr.f32.gmra.mxu0 %v3786_v40  ;;  %v2757_v24 = vpop.f32.mrf.mxu0  ;;  %v2804_v29 = vpop.f32.mrf.mxu1 }
 0x154   :  { %3236 = vmatmul.mubr.f32.gmra.mxu1 %v3735_v9 }
 0x155   :  { %3238 = vmatprep.mubr.msk.f32.mxu1 %vm3445_vm0, %v3444_v0 }
 0x157   :  { %v602_v8 = vpop.f32.mrf.mxu0  ;;  %v721_v30 = vpop.f32.mrf.mxu1 }
 0x158   :  { %3239 = vmatmul.mubr.f32.gmra.mxu1 %v3759_v3  ;;  %v603_v48 = vadd.f32 %v602_v8, %v4455_v20  ;;  %v722_v59 = vadd.f32 %v721_v30, %v589_v10 }
 0x159   :  { %3241 = vmatprep.mubr.msk.f32.mxu1 %vm3445_vm0, %v3444_v0  ;;  %v2760_v38 = vpop.f32.mrf.mxu0  ;;  %v2807_v6 = vpop.f32.mrf.mxu1 }
 0x15c   :  { %3242 = vmatmul.mubr.f32.gmra.mxu1 %v3786_v40 }
 0x15d   :  { %v609_v60 = vpop.f32.mrf.mxu0  ;;  %v729_v13 = vpop.f32.mrf.mxu1 }
 0x15e   :  { %v610_v9 = vadd.f32 %v609_v60, %v465_v55  ;;  %v730_v56 = vadd.f32 %v729_v13, %v596_v28 }
 0x15f   :  { %v2763_v32 = vpop.f32.mrf.mxu0  ;;  %v2810_v41 = vpop.f32.mrf.mxu1 }
 0x163   :  { %v616_v26 = vpop.f32.mrf.mxu0  ;;  %v737_v2 = vpop.f32.mrf.mxu1 }
 0x164   :  { %v617_v15 = vadd.f32 %v616_v26, %v471_v1  ;;  %v738_v3 = vadd.f32 %v737_v2, %v603_v48 }
 0x165   :  { %v2813_v22 = vpop.f32.mrf.mxu1  ;;  %v2766_v49 = vpop.f32.mrf.mxu0 }
 0x169   :  { %v745_v63 = vpop.f32.mrf.mxu1 }
 0x16a   :  { %v746_v5 = vadd.f32 %v745_v63, %v610_v9 }
 0x16b   :  { %v2816_v18 = vpop.f32.mrf.mxu1 }
 0x16e   :  { %v753_v0 = vpop.f32.mrf.mxu1  ;;  %v872_v33 = vpop.f32.mrf.mxu0 }
 0x16f   :  { %v754_v27 = vadd.f32 %v753_v0, %v617_v15  ;;  %v873_v35 = vadd.f32 %v872_v33, %v706_v53 }
 0x170   :  { %v2854_v40 = vpop.f32.mrf.mxu0  ;;  %v2819_v47 = vpop.f32.mrf.mxu1 }
 0x174   :  { %v878_v12 = vpop.f32.mrf.mxu0 }
 0x175   :  { %v879_v17 = vadd.f32 %v878_v12, %v714_v42 }
 0x176   :  { %v2857_v16 = vpop.f32.mrf.mxu0 }
 0x179   :  { %v884_v7 = vpop.f32.mrf.mxu0  ;;  %v995_v11 = vpop.f32.mrf.mxu1 }
 0x17a   :  { %v885_v25 = vadd.f32 %v884_v7, %v722_v59  ;;  %v4516_v36 = vadd.f32 %v995_v11, %v873_v35 }
 0x17b   :  { %v2860_v4 = vpop.f32.mrf.mxu0  ;;  %v2907_v20 = vpop.f32.mrf.mxu1 }
 0x17f   :  { %v890_v37 = vpop.f32.mrf.mxu0  ;;  %v1001_v43 = vpop.f32.mrf.mxu1 }
 0x180   :  { %v891_v21 = vadd.f32 %v890_v37, %v730_v56  ;;  %v4518_v44 = vadd.f32 %v1001_v43, %v879_v17 }
 0x181   :  { %v2863_v34 = vpop.f32.mrf.mxu0  ;;  %v2910_v55 = vpop.f32.mrf.mxu1 }
 0x185   :  { %v896_v50 = vpop.f32.mrf.mxu0  ;;  %v1007_v45 = vpop.f32.mrf.mxu1 }
 0x186   :  { %v897_v31 = vadd.f32 %v896_v50, %v738_v3  ;;  %v4520_v23 = vadd.f32 %v1007_v45, %v885_v25 }
 0x187   :  { %v2866_v46 = vpop.f32.mrf.mxu0  ;;  %v2913_v1 = vpop.f32.mrf.mxu1 }
 0x188   :  { %v1934_v46 = vmul.f32 2.0, %v4516_v36  ;;  %v1973_v1 = vlaneseq }
 0x18b   :  { %v902_v14 = vpop.f32.mrf.mxu0  ;;  %v1013_v39 = vpop.f32.mrf.mxu1 }
 0x18c   :  { %v903_v57 = vadd.f32 %v902_v14, %v746_v5  ;;  %v4522_v58 = vadd.f32 %v1013_v39, %v891_v21 }
 0x18d   :  { %v2869_v61 = vpop.f32.mrf.mxu0  ;;  %v2916_v62 = vpop.f32.mrf.mxu1 }
 0x18e   :  { %v1974_v61 = vshrl.u32 %v1973_v1, 7 }
 0x191   :  { %v908_v10 = vpop.f32.mrf.mxu0  ;;  %v1019_v53 = vpop.f32.mrf.mxu1 }
 0x192   :  { %v909_v51 = vadd.f32 %v908_v10, %v754_v27  ;;  %v4524_v54 = vadd.f32 %v1019_v53, %v897_v31  ;;  %v4556_v10 = vmul.f32 2.0, %v4518_v44 }
 0x193   :  { %v2919_v19 = vpop.f32.mrf.mxu1  ;;  %v2872_v52 = vpop.f32.mrf.mxu0 }
 0x194   :  { %v1975_v52 = vsub.s32 0, %v1974_v61 }
 0x197   :  { %v1025_v28 = vpop.f32.mrf.mxu1 }
 0x198   :  { %v4526_v42 = vadd.f32 %v1025_v28, %v903_v57  ;;  %v1941_v57 = vsub.f32 1.0, %v1934_v46 }
 0x199   :  { %v2922_v24 = vpop.f32.mrf.mxu1 }
 0x19c   :  { %v1031_v29 = vpop.f32.mrf.mxu1 }
 0x19d   :  { %v4528_v8 = vadd.f32 %v1031_v29, %v909_v51  ;;  %v1122_v30 = vpop.f32.mrf.mxu0  ;;  %v123_v51 = vpop.xlane.xlu0 %122  ;;  %v113_v29 = vld [vmem:[#allocation7 + $0x3] sm:$0x1] }
 0x19e   :  { %v2925_v48 = vpop.f32.mrf.mxu1  ;;  %v4560_v28 = vadd.f32 %v1941_v57, %v123_v51 }
 0x19f   :  { %v2960_v59 = vpop.f32.mrf.mxu0  ;;  %v4564_v48 = vmul.f32 2.0, %v4520_v23 }
 0x1a0   :  { %v4566_v59 = vrot.slane %v113_v29, %v1975_v52 }
 0x1a6   :  { %v1132_v38 = vpop.f32.mrf.mxu0  ;;  %v1333_v6 = vpop.f32.mrf.mxu1 }
 0x1a7   :  { %v4530_v60 = vadd.f32 %v1333_v6, %v1122_v30  ;;  %v1942_v30 = vsub.f32 1.0, %v4556_v10  ;;  %v4570_v6 = vmul.f32 2.0, %v4522_v58 }
 0x1a8   :  { %v2963_v13 = vpop.f32.mrf.mxu0  ;;  %v3013_v9 = vpop.f32.mrf.mxu1 }
 0x1ab   :  { %v1142_v56 = vpop.f32.mrf.mxu0 }
 0x1ad   :  { %v2966_v32 = vpop.f32.mrf.mxu0 }
 0x1ae   :  { %v4576_v32 = vpop.xlane.xlu1 %126 }
 0x1b0   :  { %v1339_v41 = vpop.f32.mrf.mxu1 }
 0x1b1   :  { %v4532_v26 = vadd.f32 %v1339_v41, %v1132_v38  ;;  %v1152_v2 = vpop.f32.mrf.mxu0  ;;  %v2016_v38 = vmul.f32 2.0, %v4560_v28  ;;  %v4935_v41 = vsub.f32 1.0, %v4564_v48 }
 0x1b2   :  { %v3016_v15 = vpop.f32.mrf.mxu1 }
 0x1b3   :  { %v2969_v3 = vpop.f32.mrf.mxu0 }
 0x1b6   :  { %v1345_v22 = vpop.f32.mrf.mxu1 }
 0x1b7   :  { %v1162_v49 = vpop.f32.mrf.mxu0  ;;  %v4534_v63 = vadd.f32 %v1345_v22, %v1142_v56  ;;  %v125_v56 = vpop.xlane.xlu0 %124  ;;  %v2044_v22 = vmul.f32 %v113_v29, %v113_v29 }
 0x1b8   :  { %v3019_v5 = vpop.f32.mrf.mxu1 }
 0x1b9   :  { %v2972_v18 = vpop.f32.mrf.mxu0  ;;  %v4934_v5 = vsub.f32 1.0, %v4570_v6 }
 0x1ba   :  { %v4586_v18 = vmul.f32 2.0, %v4524_v54 }
 0x1bc   :  { %v1351_v0 = vpop.f32.mrf.mxu1 }
 0x1bd   :  { %v4536_v33 = vadd.f32 %v1351_v0, %v1152_v2  ;;  %v1172_v27 = vpop.f32.mrf.mxu0  ;;  %v4581_v2 = vadd.f32 %v1942_v30, %v125_v56  ;;  %v4588_v0 = vld [vmem:[#allocation7] ss:$0 sm:$0xff] }
 0x1be   :  { %v3022_v35 = vpop.f32.mrf.mxu1 }
 0x1bf   :  { %v2975_v40 = vpop.f32.mrf.mxu0  ;;  %v2017_v35 = vmul.f32 2.0, %v4581_v2 }
 0x1c0   :  { %v4596_v40 = vadd.f32 %v4935_v41, %v4576_v32 }
 0x1c2   :  { %v1357_v47 = vpop.f32.mrf.mxu1 }
 0x1c3   :  { %v1182_v12 = vpop.f32.mrf.mxu0  ;;  %v4538_v17 = vadd.f32 %v1357_v47, %v1162_v49  ;;  %v2023_v49 = vmul.f32 %v2016_v38, %v4566_v59 }
 0x1c4   :  { %v3025_v16 = vpop.f32.mrf.mxu1 }
 0x1c5   :  { %v2978_v7 = vpop.f32.mrf.mxu0 }
 0x1c6   :  { %v4604_v7 = vrot.slane %v2044_v22, %v1975_v52 }
 0x1c7   :  { %v1363_v11 = vpop.f32.mrf.mxu1 }
 0x1c8   :  { %v4540_v25 = vadd.f32 %v1363_v11, %v1172_v27  ;;  %v2002_v27 = vmul.f32 %v4560_v28, %v4560_v28  ;;  %v2030_v11 = vmul.f32 %v2023_v49, %v4516_v36  ;;  %v2018_v36 = vmul.f32 2.0, %v4596_v40 }
 0x1c9   :  { %v4542_v4 = vpop.f32.mrf.mxu0  ;;  %v3028_v20 = vpop.f32.mrf.mxu1  ;;  %v2049_v61 = vmul.f32 %v4604_v7, %v123_v51 }
 0x1ca   :  { %v2009_v1 = vmul.f32 %v4588_v0, %v2002_v27  ;;  %v2025_v27 = vmul.f32 %v2018_v36, %v4566_v59 }
 0x1cb   :  { %v3066_v37 = vpop.f32.mrf.mxu0 }
 0x1cd   :  { %v1369_v43 = vpop.f32.mrf.mxu1 }
 0x1ce   :  { %v4544_v21 = vadd.f32 %v1369_v43, %v1182_v12  ;;  %v4600_v12 = vpop.xlane.xlu1 %128  ;;  %v1959_v43 = vmul.f32 %v4588_v0, %v123_v51 }
 0x1cf   :  { %v3031_v34 = vpop.f32.mrf.mxu1  ;;  %v4610_v20 = vadd.f32 %v4934_v5, %v4600_v12 }
 0x1d0   :  { %4982 = vst [vmem:[#allocation15_spill] sm:$0xff] %v4544_v21  ;;  %v4546_v55 = vpop.f32.mrf.mxu0  ;;  %v4933_v34 = vsub.f32 1.0, %v4586_v18  ;;  %v4626_v29 = vadd.f32 %v1959_v43, %v1941_v57  ;;  %v1960_v57 = vmul.f32 %v4588_v0, %v125_v56  ;;  %v4988_v21 = vsub.f32 1.0, %v4564_v48 }
 0x1d1   :  { %4983 = vst [vmem:[#allocation18_spill] sm:$0xff] %v4610_v20  ;;  %v2019_v52 = vmul.f32 2.0, %v4610_v20 }
 0x1d2   :  { %v3069_v50 = vpop.f32.mrf.mxu0  ;;  %v2077_v5 = vmul.f32 %v4626_v29, %v4626_v29 }
 0x1d3   :  { %v4615_v50 = vmul.f32 2.0, %v4526_v42 }
 0x1d5   :  { %v4936_v38 = vsub.f32 1.0, %v4615_v50 }
 0x1d6   :  { %v4548_v45 = vpop.f32.mrf.mxu0  ;;  %v4550_v31 = vpop.f32.mrf.mxu1 }
 0x1d8   :  { %v3072_v14 = vpop.f32.mrf.mxu0  ;;  %v3119_v39 = vpop.f32.mrf.mxu1 }
 0x1d9   :  { %v2024_v14 = vmul.f32 %v2017_v35, %v4566_v59  ;;  %v2037_v39 = vsub.f32 %v2009_v1, %v2030_v11  ;;  %v2026_v1 = vmul.f32 %v2019_v52, %v4566_v59  ;;  %v2005_v52 = vmul.f32 %v4610_v20, %v4610_v20 }
 0x1db   :  { %v2031_v49 = vmul.f32 %v2024_v14, %v4518_v44 }
 0x1dc   :  { %v4553_v62 = vpop.f32.mrf.mxu0 }
 0x1dd   :  { %v4558_v53 = vpop.f32.mrf.mxu1 }
 0x1de   :  { %v3075_v19 = vpop.f32.mrf.mxu0 }
 0x1df   :  { %v3122_v24 = vpop.f32.mrf.mxu1  ;;  %v2003_v19 = vmul.f32 %v4581_v2, %v4581_v2 }
 0x1e0   :  { %v4624_v24 = vpop.xlane.xlu0 %130 }
 0x1e1   :  { %v2010_v43 = vmul.f32 %v4588_v0, %v2003_v19  ;;  %v2032_v19 = vmul.f32 %v2025_v27, %v4520_v23  ;;  %v4675_v23 = vld [vmem:[#allocation7 + $0x2] ss:$0 sm:$0xff]  ;;  %v2051_v27 = vmul.f32 %v4604_v7, %v4576_v32 }
 0x1e3   :  { %v4572_v13 = vpop.f32.mrf.mxu0  ;;  %v4574_v9 = vpop.f32.mrf.mxu1 }
 0x1e5   :  { %v3078_v15 = vpop.f32.mrf.mxu0  ;;  %v3125_v3 = vpop.f32.mrf.mxu1 }
 0x1e6   :  { %v4632_v15 = vadd.f32 %v4933_v34, %v4624_v24  ;;  %v4635_v3 = vmul.f32 2.0, %v4528_v8  ;;  %v4648_v34 = vpop.xlane.xlu1 %132 }
 0x1e7   :  { %v4656_v14 = vadd.f32 %v4936_v38, %v4648_v34  ;;  %v1961_v38 = vmul.f32 %v4588_v0, %v4576_v32 }
 0x1e8   :  { %4984 = vst [vmem:[#allocation16_spill] sm:$0xff] %v4632_v15  ;;  %v2020_v44 = vmul.f32 2.0, %v4632_v15 }
 0x1e9   :  { %v4598_v47 = vpop.f32.mrf.mxu0 }
 0x1ea   :  { %v4602_v16 = vpop.f32.mrf.mxu1  ;;  %v2027_v10 = vmul.f32 %v2020_v44, %v4566_v59  ;;  %v2006_v44 = vmul.f32 %v4632_v15, %v4632_v15 }
 0x1eb   :  { %v3081_v37 = vpop.f32.mrf.mxu0 }
 0x1ec   :  { %v3128_v46 = vpop.f32.mrf.mxu1  ;;  %v2056_v37 = vadd.f32 %v2049_v61, %v2037_v39  ;;  %v2038_v39 = vsub.f32 %v2010_v43, %v2031_v49  ;;  %v2050_v61 = vmul.f32 %v4604_v7, %v125_v56  ;;  %v2033_v49 = vmul.f32 %v2026_v1, %v4522_v58  ;;  %v4673_v56 = vpop.xlane.xlu0 %134 }
 0x1ed   :  { %v2004_v46 = vmul.f32 %v4596_v40, %v4596_v40  ;;  %v1962_v58 = vmul.f32 %v4588_v0, %v4600_v12  ;;  %v2012_v1 = vmul.f32 %v4588_v0, %v2005_v52 }
 0x1ee   :  { %v2084_v41 = vsub.f32 %v2077_v5, %v2056_v37  ;;  %v4987_v5 = vsub.f32 1.0, %v4635_v3  ;;  %v2057_v43 = vadd.f32 %v2050_v61, %v2038_v39  ;;  %v2034_v61 = vmul.f32 %v2027_v10, %v4524_v54 }
 0x1ef   :  { %v2011_v36 = vmul.f32 %v4588_v0, %v2004_v46  ;;  %v2007_v54 = vmul.f32 %v4656_v14, %v4656_v14 }
 0x1f0   :  { %v4637_v51 = vpop.f32.mrf.mxu0  ;;  %v4639_v22 = vpop.f32.mrf.mxu1 }
 0x1f1   :  { %4985 = vst [vmem:[#allocation20_spill] sm:$0xff] %v4637_v51  ;;  %v2039_v46 = vsub.f32 %v2011_v36, %v2032_v19  ;;  %v2095_v51 = vmul.f32 %v4675_v23, %v2084_v41  ;;  %v2052_v36 = vmul.f32 %v4604_v7, %v4600_v12  ;;  %v4989_v41 = vsub.f32 1.0, %v4570_v6 }
 0x1f2   :  { %v3131_v35 = vpop.f32.mrf.mxu1  ;;  %v3084_v11 = vpop.f32.mrf.mxu0  ;;  %v2013_v12 = vmul.f32 %v4588_v0, %v2006_v44  ;;  %v1474_v6 = vadd.f32 %v4542_v4, %v4530_v60  ;;  %v4990_v4 = vsub.f32 1.0, %v4586_v18 }
 0x1f3   :  { %v4665_v35 = vadd.f32 %v1960_v57, %v1942_v30  ;;  %v2021_v30 = vmul.f32 2.0, %v4656_v14  ;;  %v4684_v57 = vadd.f32 %v4987_v5, %v4673_v56  ;;  %v4696_v5 = vadd.f32 %v1961_v38, %v4988_v21 }
 0x1f4   :  { %v2058_v20 = vadd.f32 %v2051_v27, %v2039_v46  ;;  %v4707_v48 = vadd.f32 %v1962_v58, %v4989_v41  ;;  %v1963_v38 = vmul.f32 %v4588_v0, %v4624_v24  ;;  %3253 = vrcp.f32 %v2095_v51 }
 0x1f5   :  { %v2078_v32 = vmul.f32 %v4665_v35, %v4665_v35  ;;  %v2028_v19 = vmul.f32 %v2021_v30, %v4566_v59  ;;  %v2022_v52 = vmul.f32 2.0, %v4684_v57  ;;  %v2079_v10 = vmul.f32 %v4696_v5, %v4696_v5 }
 0x1f6   :  { %v4667_v11 = vpop.f32.mrf.mxu1  ;;  %v2053_v46 = vmul.f32 %v4604_v7, %v4624_v24  ;;  %v2014_v24 = vmul.f32 %v4588_v0, %v2007_v54 }
 0x1f7   :  { %4986 = vst [vmem:[#allocation17_spill] sm:$0xff] %v4667_v11  ;;  %v2085_v15 = vsub.f32 %v2078_v32, %v2057_v43  ;;  %v2041_v43 = vsub.f32 %v2013_v12, %v2034_v61  ;;  %v2035_v58 = vmul.f32 %v2028_v19, %v4526_v42  ;;  %v4722_v32 = vld [vmem:[#allocation7 + $0x1] ss:$0 sm:$0xff]  ;;  %v2086_v44 = vsub.f32 %v2079_v10, %v2058_v20 }
 0x1f8   :  { %v3134_v37 = vpop.f32.mrf.mxu1  ;;  %v4730_v61 = vadd.f32 %v1963_v38, %v4990_v4  ;;  %v1964_v42 = vmul.f32 %v4588_v0, %v4648_v34  ;;  %v2008_v19 = vmul.f32 %v4684_v57, %v4684_v57  ;;  %v1481_v20 = vadd.f32 %v4546_v55, %v4532_v26 }
 0x1f9   :  { %v2040_v37 = vsub.f32 %v2012_v1, %v2033_v49  ;;  %v2029_v1 = vmul.f32 %v2022_v52, %v4566_v59  ;;  %v2096_v51 = vmul.f32 %v4675_v23, %v2085_v15  ;;  %v2060_v18 = vadd.f32 %v2053_v46, %v2041_v43 }
 0x1fa   :  { %v2054_v38 = vmul.f32 %v4604_v7, %v4648_v34  ;;  %v1613_v10 = vadd.f32 %v4558_v53, %v1481_v20  ;;  %v2081_v55 = vmul.f32 %v4730_v61, %v4730_v61  ;;  %v1965_v34 = vmul.f32 %v4588_v0, %v4673_v56 }
 0x1fb   :  { %v1771_v39 = vpop.f32.mrf.mxu0  ;;  %v2059_v30 = vadd.f32 %v2052_v36, %v2040_v37  ;;  %v2080_v37 = vmul.f32 %v4707_v48, %v4707_v48  ;;  %v1605_v36 = vadd.f32 %v4550_v31, %v1474_v6  ;;  %v1988_v31 = vmul.f32 %v4722_v32, %v4560_v28 }
 0x1fc   :  { %v4703_v11 = vpop.f32.mrf.mxu1  ;;  %v2036_v12 = vmul.f32 %v2029_v1, %v4528_v8  ;;  %3255 = vrcp.f32 %v2096_v51  ;;  %v4991_v28 = vsub.f32 1.0, %v4615_v50  ;;  %v2015_v8 = vmul.f32 %v4588_v0, %v2008_v19 }
 0x1fd   :  { %v3172_v21 = vpop.f32.mrf.mxu0  ;;  %v2087_v15 = vsub.f32 %v2080_v37, %v2059_v30  ;;  %v1772_v52 = vadd.f32 %v1771_v39, %v1605_v36  ;;  %v1488_v53 = vadd.f32 %v4548_v45, %v4534_v63  ;;  %v2088_v51 = vsub.f32 %v2081_v55, %v2060_v18 }
 0x1fe   :  { %v3137_v49 = vpop.f32.mrf.mxu1  ;;  %v2042_v21 = vsub.f32 %v2014_v24, %v2035_v58  ;;  %v4750_v39 = vadd.f32 %v1964_v42, %v4991_v28  ;;  %v2043_v50 = vsub.f32 %v2015_v8, %v2036_v12  ;;  %v2055_v37 = vmul.f32 %v4604_v7, %v4673_v56 }
 0x1ff   :  { %v1777_v27 = vpop.f32.mrf.mxu0  ;;  %v2097_v49 = vmul.f32 %v4675_v23, %v2086_v44  ;;  %v2098_v43 = vmul.f32 %v4675_v23, %v2087_v15  ;;  %v4992_v45 = vsub.f32 1.0, %v4635_v3  ;;  %v1989_v24 = vmul.f32 %v4722_v32, %v4581_v2 }
 0x200   :  { %v1778_v46 = vadd.f32 %v1777_v27, %v1613_v10  ;;  %v2061_v44 = vadd.f32 %v2054_v38, %v2042_v21  ;;  %v2082_v63 = vmul.f32 %v4750_v39, %v4750_v39  ;;  %v1495_v7 = vadd.f32 %v4553_v62, %v4536_v33 }
 0x201   :  { %v3175_v60 = vpop.f32.mrf.mxu0  ;;  %3257 = vrcp.f32 %v2097_v49  ;;  %v4766_v27 = vadd.f32 %v1965_v34, %v4992_v45  ;;  %v2062_v3 = vadd.f32 %v2055_v37, %v2043_v50  ;;  %v1502_v62 = vadd.f32 %v4572_v13, %v4538_v17 }
 0x202   :  { %v1621_v60 = vadd.f32 %v4574_v9, %v1488_v53  ;;  %3259 = vrcp.f32 %v2098_v43  ;;  %v2089_v18 = vsub.f32 %v2082_v63, %v2061_v44  ;;  %v1629_v38 = vadd.f32 %v4602_v16, %v1495_v7  ;;  %v4995_v7 = vld [vmem:[#allocation15_spill] sm:$0xff] }
 0x203   :  { %v1783_v41 = vpop.f32.mrf.mxu0  ;;  %v2083_v33 = vmul.f32 %v4766_v27, %v4766_v27  ;;  %v1637_v8 = vadd.f32 %v4639_v22, %v1502_v62 }
 0x204   :  { %v1894_v54 = vpop.f32.mrf.mxu1  ;;  %v1784_v56 = vadd.f32 %v1783_v41, %v1621_v60  ;;  %v1990_v41 = vmul.f32 %v4722_v32, %v4596_v40 }
 0x205   :  { %v1895_v30 = vadd.f32 %v1894_v54, %v1772_v52  ;;  %v3178_v26 = vpop.f32.mrf.mxu0  ;;  %v3254_v52 = vpop.eup %3253  ;;  %v2090_v34 = vsub.f32 %v2083_v33, %v2062_v3 }
 0x206   :  { %v3225_v6 = vpop.f32.mrf.mxu1 }
 0x207   :  { %v1977_v58 = vmul.f32 %v4566_v59, %v1895_v30  ;;  %v1789_v1 = vpop.f32.mrf.mxu0 }
 0x208   :  { %v1900_v36 = vpop.f32.mrf.mxu1  ;;  %v1790_v30 = vadd.f32 %v1789_v1, %v1629_v38 }
 0x209   :  { %v1995_v0 = vsub.f32 %v1977_v58, %v1988_v31  ;;  %v1901_v4 = vadd.f32 %v1900_v36, %v1778_v46  ;;  %v3181_v42 = vpop.f32.mrf.mxu0  ;;  %v2099_v31 = vmul.f32 %v4675_v23, %v2088_v51  ;;  %v3256_v46 = vpop.eup %3255  ;;  %v1509_v58 = vadd.f32 %v4598_v47, %v4540_v25  ;;  %v4993_v51 = vld [vmem:[#allocation18_spill] sm:$0xff] }
 0x20a   :  { %v3228_v19 = vpop.f32.mrf.mxu1  ;;  %v1991_v44 = vmul.f32 %v4722_v32, %v4993_v51 }
 0x20b   :  { %v2063_v9 = vmul.f32 2.0, %v1995_v0  ;;  %v1978_v15 = vmul.f32 %v4566_v59, %v1901_v4  ;;  %v1795_v20 = vpop.f32.mrf.mxu0  ;;  %3261 = vrcp.f32 %v2099_v31  ;;  %v2101_v0 = vmul.f32 %v4675_v23, %v2090_v34  ;;  %v4994_v4 = vld [vmem:[#allocation17_spill] sm:$0xff] }
 0x20c   :  { %v1906_v21 = vpop.f32.mrf.mxu1  ;;  %v1796_v1 = vadd.f32 %v1795_v20, %v1637_v8  ;;  %v1645_v42 = vadd.f32 %v4994_v4, %v1509_v58 }
 0x20d   :  { %v2070_v2 = vmul.f32 %v2063_v9, %v4626_v29  ;;  %v1996_v12 = vsub.f32 %v1978_v15, %v1989_v24  ;;  %v1907_v54 = vadd.f32 %v1906_v21, %v1784_v56  ;;  %v3184_v49 = vpop.f32.mrf.mxu0  ;;  %v2100_v29 = vmul.f32 %v4675_v23, %v2089_v18  ;;  %v4996_v56 = vld [vmem:[#allocation20_spill] sm:$0xff] }
 0x20e   :  { %v3231_v10 = vpop.f32.mrf.mxu1  ;;  %v1516_v9 = vadd.f32 %v4996_v56, %v4995_v7  ;;  %v4997_v15 = vld [vmem:[#allocation16_spill] sm:$0xff]  ;;  %v3258_v23 = vpop.eup %3257 }
 0x20f   :  { %v2064_v26 = vmul.f32 2.0, %v1996_v12  ;;  %v1979_v55 = vmul.f32 %v4566_v59, %v1907_v54  ;;  %v1801_v16 = vpop.f32.mrf.mxu0  ;;  %v4783_v28 = vmul.f32 %v3254_v52, %v2070_v2  ;;  %3263 = vrcp.f32 %v2100_v29  ;;  %v3260_v12 = vpop.eup %3259 }
 0x210   :  { %v1912_v6 = vpop.f32.mrf.mxu1  ;;  %v1992_v20 = vmul.f32 %v4722_v32, %v4997_v15  ;;  %v1802_v18 = vadd.f32 %v1801_v16, %v1645_v42  ;;  %v1653_v54 = vadd.f32 %v4703_v11, %v1516_v9 }
 0x211   :  { %v2071_v17 = vmul.f32 %v2064_v26, %v4665_v35  ;;  %v1997_v13 = vsub.f32 %v1979_v55, %v1990_v41  ;;  %v1913_v43 = vadd.f32 %v1912_v6, %v1790_v30  ;;  %v3187_v40 = vpop.f32.mrf.mxu0  ;;  %v4789_v53 = vand.u32 2147483647, %v4783_v28 }
 0x212   :  { %v3234_v50 = vpop.f32.mrf.mxu1  ;;  %v1993_v41 = vmul.f32 %v4722_v32, %v4656_v14  ;;  %vm2207_vm12 = vcmp.ge.f32.partialorder %v4783_v28, 0.0 }
 0x213   :  { %v2065_v37 = vmul.f32 2.0, %v1997_v13  ;;  %v1980_v22 = vmul.f32 %v4566_v59, %v1913_v43  ;;  %v1807_v36 = vpop.f32.mrf.mxu0  ;;  %v2123_v35 = vmul.f32 %v4789_v53, %v4789_v53  ;;  %v4798_v60 = vmul.f32 %v3256_v46, %v2071_v17 }
 0x214   :  { %v1918_v25 = vpop.f32.mrf.mxu1  ;;  %v1808_v55 = vadd.f32 %v1807_v36, %v1653_v54  ;;  %v1994_v13 = vmul.f32 %v4722_v32, %v4684_v57 }
 0x215   :  { %v2072_v47 = vmul.f32 %v2065_v37, %v4696_v5  ;;  %v1998_v63 = vsub.f32 %v1980_v22, %v1991_v44  ;;  %v1919_v45 = vadd.f32 %v1918_v25, %v1796_v1  ;;  %v3190_v24 = vpop.f32.mrf.mxu0  ;;  %v4803_v19 = vadd.f32 1.0, %v2123_v35 }
 0x216   :  { %v3237_v52 = vpop.f32.mrf.mxu1  ;;  %v4810_v31 = vand.u32 2147483647, %v4798_v60  ;;  %vm2208_vm15 = vcmp.ge.f32.partialorder %v4798_v60, 0.0 }
 0x217   :  { %v2066_v3 = vmul.f32 2.0, %v1998_v63  ;;  %v1981_v5 = vmul.f32 %v4566_v59, %v1919_v45  ;;  %3265 = vrsqrt.f32 %v4803_v19  ;;  %v4816_v2 = vmul.f32 %v3258_v23, %v2072_v47 }
 0x218   :  { %3267 = vrcp.f32 %v2101_v0  ;;  %v1924_v21 = vpop.f32.mrf.mxu1  ;;  %v2124_v38 = vmul.f32 %v4810_v31, %v4810_v31  ;;  %v3262_v11 = vpop.eup %3261  ;;  %vm2139_vm1 = vcmp.eq.f32.partialorder %v4803_v19, inf  ;;  %vm2141_vm2 = vcmp.eq.f32.partialorder %v4803_v19, 0.0 }
 0x219   :  { %v2073_v49 = vmul.f32 %v2066_v3, %v4707_v48  ;;  %v1999_v33 = vsub.f32 %v1981_v5, %v1992_v20  ;;  %v1925_v62 = vadd.f32 %v1924_v21, %v1802_v18  ;;  %v4823_v26 = vand.u32 2147483647, %v4816_v2 }
 0x21a   :  { %v3240_v10 = vpop.f32.mrf.mxu1  ;;  %v2131_v30 = vadd.f32 1.0, %v2124_v38  ;;  %v2142_v25 = vand.u32 2147483648, %v4803_v19 }
 0x21b   :  { %v2067_v16 = vmul.f32 2.0, %v1999_v33  ;;  %v1982_v29 = vmul.f32 %v4566_v59, %v1925_v62  ;;  %v4826_v34 = vmul.f32 %v3260_v12, %v2073_v49  ;;  %v2125_v14 = vmul.f32 %v4823_v26, %v4823_v26 }
 0x21c   :  { %v1930_v8 = vpop.f32.mrf.mxu1  ;;  %3269 = vrsqrt.f32 %v2131_v30  ;;  %v3264_v44 = vpop.eup %3263  ;;  %vm2146_vm3 = vcmp.eq.f32.partialorder %v2131_v30, inf  ;;  %v2149_v52 = vand.u32 2147483648, %v2131_v30  ;;  %vm2148_vm4 = vcmp.eq.f32.partialorder %v2131_v30, 0.0 }
 0x21d   :  { %v2074_v48 = vmul.f32 %v2067_v16, %v4730_v61  ;;  %v2000_v6 = vsub.f32 %v1982_v29, %v1993_v41  ;;  %v1931_v17 = vadd.f32 %v1930_v8, %v1808_v55  ;;  %v4834_v40 = vand.u32 2147483647, %v4826_v34 }
 0x21e   :  { %v3243_v43 = vpop.f32.mrf.mxu1  ;;  %v2132_v1 = vadd.f32 1.0, %v2125_v14  ;;  %v4871_v14 = vld [vmem:[#allocation7 + $0x4] ss:$0 sm:$0xff] }
 0x21f   :  { %v2068_v46 = vmul.f32 2.0, %v2000_v6  ;;  %v1983_v58 = vmul.f32 %v4566_v59, %v1931_v17  ;;  %v4837_v51 = vmul.f32 %v3262_v11, %v2074_v48  ;;  %v2126_v61 = vmul.f32 %v4834_v40, %v4834_v40 }
 0x220   :  { %3271 = vrsqrt.f32 %v2132_v1  ;;  %vm2153_vm5 = vcmp.eq.f32.partialorder %v2132_v1, inf  ;;  %v2156_v38 = vand.u32 2147483648, %v2132_v1  ;;  %vm2155_vm6 = vcmp.eq.f32.partialorder %v2132_v1, 0.0 }
 0x221   :  { %v2075_v50 = vmul.f32 %v2068_v46, %v4750_v39  ;;  %v2001_v37 = vsub.f32 %v1983_v58, %v1994_v13  ;;  %v2133_v22 = vadd.f32 1.0, %v2126_v61  ;;  %v4843_v57 = vand.u32 2147483647, %v4837_v51 }
 0x223   :  { %v2069_v32 = vmul.f32 2.0, %v2001_v37  ;;  %v4845_v36 = vmul.f32 %v3264_v44, %v2075_v50  ;;  %3273 = vrsqrt.f32 %v2133_v22  ;;  %v2127_v42 = vmul.f32 %v4843_v57, %v4843_v57 }
 0x224   :  { %v3266_v35 = vpop.eup %3265  ;;  %vm2160_vm7 = vcmp.eq.f32.partialorder %v2133_v22, inf  ;;  %v2163_v41 = vand.u32 2147483648, %v2133_v22  ;;  %vm2162_vm8 = vcmp.eq.f32.partialorder %v2133_v22, 0.0 }
 0x225   :  { %v3268_v59 = vpop.eup %3267  ;;  %v2076_v0 = vmul.f32 %v2069_v32, %v4766_v27  ;;  %v2138_v4 = vmul.f32 %v3266_v35, %v4803_v19  ;;  %v4852_v39 = vand.u32 2147483647, %v4845_v36  ;;  %v2134_v63 = vadd.f32 1.0, %v2127_v42 }
 0x227   :  { %v2140_v47 = vsel %vm2139_vm1, %v4803_v19, %v2138_v4  ;;  %v2128_v27 = vmul.f32 %v4852_v39, %v4852_v39  ;;  %v4860_v45 = vmul.f32 %v3268_v59, %v2076_v0  ;;  %3275 = vrsqrt.f32 %v2134_v63 }
 0x228   :  { %v2143_v24 = vsel %vm2141_vm2, %v2142_v25, %v2140_v47  ;;  %vm2167_vm9 = vcmp.eq.f32.partialorder %v2134_v63, inf  ;;  %v2170_v8 = vand.u32 2147483648, %v2134_v63  ;;  %vm2169_vm10 = vcmp.eq.f32.partialorder %v2134_v63, 0.0 }
 0x229   :  { %v3270_v7 = vpop.eup %3269  ;;  %v2186_v56 = vadd.f32 %v2143_v24, %v4789_v53  ;;  %v2135_v15 = vadd.f32 1.0, %v2128_v27  ;;  %v4864_v20 = vand.u32 2147483647, %v4860_v45  ;;  %vm2209_vm1 = vcmp.ge.f32.partialorder %v4816_v2, 0.0 }
 0x22a   :  { %v2145_v9 = vmul.f32 %v3270_v7, %v2131_v30  ;;  %vm2210_vm2 = vcmp.ge.f32.partialorder %v4826_v34, 0.0 }
 0x22b   :  { %3277 = vlog2.f32 %v2186_v56  ;;  %v2129_v18 = vmul.f32 %v4864_v20, %v4864_v20  ;;  %vm2174_vm11 = vcmp.eq.f32.partialorder %v2135_v15, inf  ;;  %v2177_v46 = vand.u32 2147483648, %v2135_v15 }
 0x22c   :  { %v2147_v19 = vsel %vm2146_vm3, %v2131_v30, %v2145_v9  ;;  %3279 = vrsqrt.f32 %v2135_v15  ;;  %vm2176_vm13 = vcmp.eq.f32.partialorder %v2135_v15, 0.0  ;;  %vm2211_vm3 = vcmp.ge.f32.partialorder %v4837_v51, 0.0 }
 0x22d   :  { %v2150_v23 = vsel %vm2148_vm4, %v2149_v52, %v2147_v19  ;;  %v3272_v3 = vpop.eup %3271  ;;  %v2136_v21 = vadd.f32 1.0, %v2129_v18  ;;  %vm2212_vm4 = vcmp.ge.f32.partialorder %v4845_v36, 0.0 }
 0x22e   :  { %v2187_v5 = vadd.f32 %v2150_v23, %v4810_v31  ;;  %v2152_v53 = vmul.f32 %v3272_v3, %v2132_v1 }
 0x22f   :  { %vm2181_vm14 = vcmp.eq.f32.partialorder %v2136_v21, inf  ;;  %vm2183_vm0 = vcmp.eq.f32.partialorder %v2136_v21, 0.0 }
 0x230   :  { %3281 = vlog2.f32 %v2187_v5  ;;  %v3274_v12 = vpop.eup %3273  ;;  %v2154_v54 = vsel %vm2153_vm5, %v2132_v1, %v2152_v53  ;;  %vm2213_vm5 = vcmp.ge.f32.partialorder %v4860_v45, 0.0 }
 0x231   :  { %3283 = vrsqrt.f32 %v2136_v21  ;;  %v2157_v49 = vsel %vm2155_vm6, %v2156_v38, %v2154_v54  ;;  %v2159_v33 = vmul.f32 %v3274_v12, %v2133_v22 }
 0x232   :  { %v2188_v62 = vadd.f32 %v2157_v49, %v4823_v26 }
 0x233   :  { %v2161_v10 = vsel %vm2160_vm7, %v2133_v22, %v2159_v33 }
 0x234   :  { %3285 = vlog2.f32 %v2188_v62  ;;  %v2164_v30 = vsel %vm2162_vm8, %v2163_v41, %v2161_v10  ;;  %v3276_v31 = vpop.eup %3275 }
 0x235   :  { %v2189_v55 = vadd.f32 %v2164_v30, %v4834_v40  ;;  %v2166_v16 = vmul.f32 %v3276_v31, %v2134_v63 }
 0x237   :  { %3287 = vlog2.f32 %v2189_v55  ;;  %v2168_v6 = vsel %vm2167_vm9, %v2134_v63, %v2166_v16 }
 0x238   :  { %v3278_v29 = vpop.eup %3277  ;;  %v2171_v17 = vsel %vm2169_vm10, %v2170_v8, %v2168_v6 }
 0x239   :  { %v3280_v11 = vpop.eup %3279  ;;  %v2194_v48 = vmul.f32 0.6931472, %v3278_v29  ;;  %v2190_v43 = vadd.f32 %v2171_v17, %v4843_v57  ;;  %v2184_v57 = vand.u32 2147483648, %v2136_v21 }
 0x23a   :  { %v2173_v26 = vmul.f32 %v3280_v11, %v2135_v15 }
 0x23b   :  { %v2214_v13 = vsub.f32 0.0, %v2194_v48  ;;  %3289 = vlog2.f32 %v2190_v43 }
 0x23c   :  { %v2175_v40 = vsel %vm2174_vm11, %v2135_v15, %v2173_v26 }
 0x23d   :  { %v3282_v58 = vpop.eup %3281  ;;  %v2221_v1 = vsel %vm2207_vm12, %v2194_v48, %v2214_v13  ;;  %v2178_v61 = vsel %vm2176_vm13, %v2177_v46, %v2175_v40 }
 0x23e   :  { %v3284_v44 = vpop.eup %3283  ;;  %v2232_v50 = vmul.f32 %v4871_v14, %v2221_v1  ;;  %v2196_v37 = vmul.f32 0.6931472, %v3282_v58  ;;  %v2191_v22 = vadd.f32 %v2178_v61, %v4852_v39 }
 0x23f   :  { %v2180_v32 = vmul.f32 %v3284_v44, %v2136_v21 }
 0x240   :  { %2239 = vmax.xlane.f32.xlu1 %v2232_v50  ;;  %v2215_v35 = vsub.f32 0.0, %v2196_v37  ;;  %3291 = vlog2.f32 %v2191_v22 }
 0x241   :  { %v2182_v28 = vsel %vm2181_vm14, %v2136_v21, %v2180_v32  ;;  %v3286_v59 = vpop.eup %3285 }
 0x242   :  { %v2222_v0 = vsel %vm2208_vm15, %v2196_v37, %v2215_v35  ;;  %v2185_v4 = vsel %vm2183_vm0, %v2184_v57, %v2182_v28  ;;  %v2198_v25 = vmul.f32 0.6931472, %v3286_v59 }
 0x243   :  { %v2233_v42 = vmul.f32 %v4871_v14, %v2222_v0  ;;  %v2192_v47 = vadd.f32 %v2185_v4, %v4864_v20 }
 0x244   :  { %v3288_v63 = vpop.eup %3287  ;;  %v2216_v39 = vsub.f32 0.0, %v2198_v25 }
 0x245   :  { %2241 = vmax.xlane.f32.xlu0 %v2233_v42  ;;  %3293 = vlog2.f32 %v2192_v47  ;;  %v2200_v27 = vmul.f32 0.6931472, %v3288_v63 }
 0x246   :  { %v2223_v24 = vsel %vm2209_vm1, %v2198_v25, %v2216_v39 }
 0x247   :  { %v2234_v60 = vmul.f32 %v4871_v14, %v2223_v24  ;;  %v2217_v7 = vsub.f32 0.0, %v2200_v27 }
 0x248   :  { %v3290_v56 = vpop.eup %3289 }
 0x249   :  { %2243 = vmax.xlane.f32.xlu1 %v2234_v60  ;;  %v2224_v9 = vsel %vm2210_vm2, %v2200_v27, %v2217_v7  ;;  %v2202_v52 = vmul.f32 0.6931472, %v3290_v56 }
 0x24a   :  { %v2235_v15 = vmul.f32 %v4871_v14, %v2224_v9 }
 0x24b   :  { %v2218_v19 = vsub.f32 0.0, %v2202_v52 }
 0x24c   :  { %2245 = vmax.xlane.f32.xlu0 %v2235_v15 }
 0x24d   :  { %v3292_v20 = vpop.eup %3291  ;;  %v2225_v2 = vsel %vm2211_vm3, %v2202_v52, %v2218_v19 }
 0x24e   :  { %v2204_v23 = vmul.f32 0.6931472, %v3292_v20  ;;  %v2236_v18 = vmul.f32 %v4871_v14, %v2225_v2 }
 0x250   :  { %v2219_v3 = vsub.f32 0.0, %v2204_v23  ;;  %2247 = vmax.xlane.f32.xlu1 %v2236_v18 }
 0x252   :  { %v3294_v5 = vpop.eup %3293  ;;  %v2226_v34 = vsel %vm2212_vm4, %v2204_v23, %v2219_v3 }
 0x253   :  { %v2237_v53 = vmul.f32 %v4871_v14, %v2226_v34  ;;  %v2206_v21 = vmul.f32 0.6931472, %v3294_v5 }
 0x255   :  { %2249 = vmax.xlane.f32.xlu0 %v2237_v53  ;;  %v2220_v38 = vsub.f32 0.0, %v2206_v21 }
 0x257   :  { %v2227_v12 = vsel %vm2213_vm5, %v2206_v21, %v2220_v38 }
 0x258   :  { %v2238_v51 = vmul.f32 %v4871_v14, %v2227_v12 }
 0x25a   :  { %2251 = vmax.xlane.f32.xlu1 %v2238_v51 }
 0x2c9   :  { %v2240_v54 = vpop.xlane.xlu1 %2239 }
 0x2ca   :  { %v2253_v49 = vsub.f32 %v2232_v50, %v2240_v54 }
 0x2cc   :  { %v2260_v33 = vmul.f32 1.442695, %v2253_v49 }
 0x2ce   :  { %3295 = vpow2.f32 %v2260_v33  ;;  %v2242_v62 = vpop.xlane.xlu0 %2241 }
 0x2cf   :  { %v2254_v36 = vsub.f32 %v2233_v42, %v2242_v62 }
 0x2d1   :  { %v2262_v41 = vmul.f32 1.442695, %v2254_v36 }
 0x2d2   :  { %v2244_v10 = vpop.xlane.xlu1 %2243 }
 0x2d3   :  { %3297 = vpow2.f32 %v2262_v41  ;;  %v2255_v30 = vsub.f32 %v2234_v60, %v2244_v10 }
 0x2d5   :  { %v2264_v31 = vmul.f32 1.442695, %v2255_v30  ;;  %v2246_v55 = vpop.xlane.xlu0 %2245 }
 0x2d6   :  { %v2256_v16 = vsub.f32 %v2235_v15, %v2246_v55 }
 0x2d7   :  { %3299 = vpow2.f32 %v2264_v31 }
 0x2d8   :  { %v2266_v29 = vmul.f32 1.442695, %v2256_v16 }
 0x2d9   :  { %v2248_v8 = vpop.xlane.xlu1 %2247 }
 0x2da   :  { %3301 = vpow2.f32 %v2266_v29  ;;  %v2257_v11 = vsub.f32 %v2236_v18, %v2248_v8 }
 0x2db   :  { %v3296_v45 = vpop.eup %3295 }
 0x2dc   :  { %2274 = vadd.xlane.f32.xlu0 %v3296_v45  ;;  %v2268_v48 = vmul.f32 1.442695, %v2257_v11 }
 0x2de   :  { %v2250_v6 = vpop.xlane.xlu0 %2249  ;;  %3303 = vpow2.f32 %v2268_v48 }
 0x2df   :  { %v2258_v17 = vsub.f32 %v2237_v53, %v2250_v6 }
 0x2e0   :  { %v3298_v26 = vpop.eup %3297 }
 0x2e1   :  { %v2270_v14 = vmul.f32 1.442695, %v2258_v17  ;;  %2276 = vadd.xlane.f32.xlu1 %v3298_v26 }
 0x2e3   :  { %3305 = vpow2.f32 %v2270_v14  ;;  %v2252_v13 = vpop.xlane.xlu1 %2251 }
 0x2e4   :  { %v2259_v43 = vsub.f32 %v2238_v51, %v2252_v13  ;;  %v3300_v46 = vpop.eup %3299 }
 0x2e5   :  { %2278 = vadd.xlane.f32.xlu0 %v3300_v46 }
 0x2e6   :  { %v2272_v40 = vmul.f32 1.442695, %v2259_v43 }
 0x2e7   :  { %v3302_v58 = vpop.eup %3301 }
 0x2e8   :  { %3307 = vpow2.f32 %v2272_v40  ;;  %2280 = vadd.xlane.f32.xlu1 %v3302_v58 }
 0x2eb   :  { %v3304_v1 = vpop.eup %3303 }
 0x2ec   :  { %2282 = vadd.xlane.f32.xlu0 %v3304_v1 }
 0x2f0   :  { %v3306_v61 = vpop.eup %3305 }
 0x2f1   :  { %2284 = vadd.xlane.f32.xlu1 %v3306_v61 }
 0x2f5   :  { %v3308_v44 = vpop.eup %3307 }
 0x2f6   :  { %2286 = vadd.xlane.f32.xlu0 %v3308_v44 }
 0x365   :  { %v2275_v50 = vpop.xlane.xlu0 %2274 }
 0x366   :  { %3309 = vrcp.f32 %v2275_v50 }
 0x36a   :  { %v2277_v37 = vpop.xlane.xlu1 %2276 }
 0x36b   :  { %3311 = vrcp.f32 %v2277_v37 }
 0x36e   :  { %v2279_v22 = vpop.xlane.xlu0 %2278 }
 0x36f   :  { %3313 = vrcp.f32 %v2279_v22 }
 0x371   :  { %v2281_v32 = vpop.xlane.xlu1 %2280 }
 0x372   :  { %3315 = vrcp.f32 %v2281_v32 }
 0x373   :  { %v3310_v35 = vpop.eup %3309 }
 0x374   :  { %v2289_v57 = vmul.f32 %v3310_v35, %v3296_v45 }
 0x375   :  { %v2283_v28 = vpop.xlane.xlu0 %2282 }
 0x376   :  { %2302 = vst [vmem:[#allocation10] sm:$0xff] %v2289_v57  ;;  %3317 = vrcp.f32 %v2283_v28 }
 0x378   :  { %v3312_v59 = vpop.eup %3311 }
 0x379   :  { %v2291_v0 = vmul.f32 %v3312_v59, %v3298_v26 }
 0x37a   :  { %v2285_v4 = vpop.xlane.xlu1 %2284 }
 0x37b   :  { %2303 = vst [vmem:[#allocation10 + $0x8] sm:$0xff] %v2291_v0  ;;  %3319 = vrcp.f32 %v2285_v4 }
 0x37c   :  { %v3314_v42 = vpop.eup %3313 }
 0x37d   :  { %v2293_v25 = vmul.f32 %v3314_v42, %v3300_v46 }
 0x37f   :  { %v2287_v47 = vpop.xlane.xlu0 %2286  ;;  %v3316_v63 = vpop.eup %3315  ;;  %2304 = vst [vmem:[#allocation10 + $0x10] sm:$0xff] %v2293_v25 }
 0x380   :  { %3321 = vrcp.f32 %v2287_v47  ;;  %v2295_v39 = vmul.f32 %v3316_v63, %v3302_v58 }
 0x382   :  { %2305 = vst [vmem:[#allocation10 + $0x18] sm:$0xff] %v2295_v39 }
 0x383   :  { %v3318_v27 = vpop.eup %3317 }
 0x384   :  { %v2297_v24 = vmul.f32 %v3318_v27, %v3304_v1 }
 0x386   :  { %2306 = vst [vmem:[#allocation10 + $0x20] sm:$0xff] %v2297_v24 }
 0x388   :  { %v3320_v60 = vpop.eup %3319 }
 0x389   :  { %v2299_v7 = vmul.f32 %v3320_v60, %v3306_v61 }
 0x38b   :  { %2307 = vst [vmem:[#allocation10 + $0x28] sm:$0xff] %v2299_v7 }
 0x38d   :  { %v3322_v56 = vpop.eup %3321 }
 0x38e   :  { %v2301_v9 = vmul.f32 %v3322_v56, %v3308_v44 }
 0x390   :  { %2308 = vst [vmem:[#allocation10 + $0x30] sm:$0xff] %v2301_v9 }
 0x391   :  { %3421 = shalt.err (!%p3418_p10)
}
 0x392   :  { %2320 = dma.vmem_to_hbm [thread:$0]  %s2315_s3, 896, %s4900_s4, [#allocation4], %s3440_s20, %s3440_s20, %s3441_s21  }
 0x393   :  { %3436 = dma.done.wait [#allocation4], 896  }
 0x394   :  { %3437 = vsyncadd [#allocation4], 4294966400 }
 0x395   :  { %2324 = vsyncpa [#allocation3], 1 }
 0x396   :  { %2325 = vsyncpa [#allocation6], 1 }
 0x397   :  { %2326 = vsyncpa [#allocation9], 1 }
 0x398   :  { %2327 = vsyncpa [#allocation4], 1 }

</bundles_post_ra>
